<compile_context>
chip_gen: v7x
topology: tpu7x:2x2x1
jax: 0.10.0
libtpu: 0.0.40
codegen_flags: <defaults>
</compile_context>

<pallas_src>
import functools
import math

import jax
import jax.numpy as jnp
from jax.experimental import pallas as pl
from jax.experimental.pallas import tpu as pltpu


_MATMUL_DTYPE = jnp.bfloat16  # MXU operand dtype; accumulation is always f32.


def _layernorm(x, w, b, eps=1e-5):
    """LayerNorm over the last axis; statistics kept in f32."""
    mu = jnp.mean(x, axis=-1, keepdims=True)
    var = jnp.mean((x - mu) ** 2, axis=-1, keepdims=True)
    return (x - mu) * jax.lax.rsqrt(var + eps) * w + b


def _to_head_major(x):
    """(rows, heads, hd) -> (heads, rows, hd) without per-head lane slicing."""
    if hasattr(pltpu, "einshape"):
        return pltpu.einshape("rhd->hrd", x)
    return jnp.swapaxes(x, 0, 1)


def _from_head_major(x):
    """(heads, rows, hd) -> (rows, heads, hd)."""
    if hasattr(pltpu, "einshape"):
        return pltpu.einshape("hrd->rhd", x)
    return jnp.swapaxes(x, 0, 1)


def _expert_layer_kernel(
    x_tile_ref,                      # (1, TS, H) f32 — rows this program produces
    x_full_ref,                      # (1, S,  H) f32 — full sequence (for K/V)
    ln1_w_ref, ln1_b_ref,            # (1, H) f32
    wq_ref, wk_ref, wv_ref,          # (H, H) bf16, pre-transposed: y = x @ w
    bq_ref, bk_ref, bv_ref,          # (1, H) f32
    wo_ref, bo_ref,                  # (H, H) bf16, (1, H) f32
    ln2_w_ref, ln2_b_ref,            # (1, H) f32
    w1_ref, b1_ref,                  # (H, 4H) bf16, (1, 4H) f32
    w2_ref, b2_ref,                  # (4H, H) bf16, (1, H) f32
    o_ref,                           # (1, TS, H) f32
    *,
    num_heads: int,
):
    f32 = jnp.float32
    same = x_full_ref is x_tile_ref           # single-tile path: tile == full sequence

    x_tile = x_tile_ref[0].astype(f32)        # (TS, H)
    x_full = x_tile if same else x_full_ref[0].astype(f32)   # (S, H)
    TS, H = x_tile.shape
    S = x_full.shape[0]
    hd = H // num_heads
    scale = 1.0 / math.sqrt(hd)

    ln1_w = ln1_w_ref[...]
    ln1_b = ln1_b_ref[...]

    # ---- LayerNorm 1 (f32 stats): full sequence feeds K/V, tile feeds Q. ----
    xn1_full_f32 = _layernorm(x_full, ln1_w, ln1_b)
    xn1_full = xn1_full_f32.astype(_MATMUL_DTYPE)                         # (S, H)
    xn1_tile = (xn1_full if same
                else _layernorm(x_tile, ln1_w, ln1_b).astype(_MATMUL_DTYPE))  # (TS, H)

    # ---- Q/K/V projections: bf16 operands, f32 accumulate, no in-kernel transpose.
    q = jnp.dot(xn1_tile, wq_ref[...], preferred_element_type=f32) + bq_ref[...]   # (TS, H)
    k = jnp.dot(xn1_full, wk_ref[...], preferred_element_type=f32) + bk_ref[...]   # (S, H)
    v = jnp.dot(xn1_full, wv_ref[...], preferred_element_type=f32) + bv_ref[...]   # (S, H)

    # ---- Multi-head attention, heads batched (leading) — one einsum per matmul. ----
    qh = _to_head_major((q * scale).reshape(TS, num_heads, hd)).astype(_MATMUL_DTYPE)
    kh = _to_head_major(k.reshape(S, num_heads, hd)).astype(_MATMUL_DTYPE)
    vh = _to_head_major(v.reshape(S, num_heads, hd)).astype(_MATMUL_DTYPE)

    s = jnp.einsum("htd,hkd->htk", qh, kh, preferred_element_type=f32)   # (nh, TS, S)
    s = s - jnp.max(s, axis=-1, keepdims=True)
    p = jnp.exp(s)                                                       # f32, unnormalized
    l_inv = pl.reciprocal(jnp.sum(p, axis=-1, keepdims=True), approx=True)

    oh = jnp.einsum("htk,hkd->htd", p.astype(_MATMUL_DTYPE), vh,
                    preferred_element_type=f32)                          # (nh, TS, hd)
    oh = oh * l_inv                                                      # 1/l fused as PV epilogue

    attn = _from_head_major(oh).reshape(TS, H).astype(_MATMUL_DTYPE)
    attn_out = jnp.dot(attn, wo_ref[...], preferred_element_type=f32) + bo_ref[...]

    # ---- residual 1 (dropout = identity in eval mode). ----
    # TODO(synk): training-mode dropout not implemented.
    x2 = x_tile + attn_out

    # ---- LayerNorm 2 + FFN: Linear(H->4H) -> ReLU -> Linear(4H->H). ----
    xn2 = _layernorm(x2, ln2_w_ref[...], ln2_b_ref[...]).astype(_MATMUL_DTYPE)
    h1 = jnp.dot(xn2, w1_ref[...], preferred_element_type=f32) + b1_ref[...]
    h1 = jnp.maximum(h1, 0.0).astype(_MATMUL_DTYPE)
    ffn = jnp.dot(h1, w2_ref[...], preferred_element_type=f32) + b2_ref[...]

    # ---- residual 2. ----
    o_ref[0] = (x2 + ffn).astype(o_ref.dtype)


def _prepare_params(params):
    """One-time host-side layout prep:
       - split in_proj into Wq/Wk/Wv,
       - transpose every matmul weight to (in_features, out_features),
       - cast matmul weights to bf16 (halves weight DMA / VMEM),
       - keep LayerNorm params and all biases in f32."""
    f32 = jnp.float32
    H = params["ln1_w"].shape[-1]
    in_w = params["in_proj_w"]                       # (3H, H) PyTorch layout
    in_b = params["in_proj_b"].reshape(3 * H)

    def t(w):                                        # (out, in) -> (in, out), bf16
        return w.T.astype(_MATMUL_DTYPE)

    return [
        params["ln1_w"].reshape(1, H).astype(f32),
        params["ln1_b"].reshape(1, H).astype(f32),
        t(in_w[0 * H:1 * H]), t(in_w[1 * H:2 * H]), t(in_w[2 * H:3 * H]),
        in_b[0 * H:1 * H].reshape(1, H).astype(f32),
        in_b[1 * H:2 * H].reshape(1, H).astype(f32),
        in_b[2 * H:3 * H].reshape(1, H).astype(f32),
        t(params["out_proj_w"]),
        params["out_proj_b"].reshape(1, H).astype(f32),
        params["ln2_w"].reshape(1, H).astype(f32),
        params["ln2_b"].reshape(1, H).astype(f32),
        t(params["ffn_w1"]),
        params["ffn_b1"].reshape(1, 4 * H).astype(f32),
        t(params["ffn_w2"]),
        params["ffn_b2"].reshape(1, H).astype(f32),
    ]


def _pick_seq_tile(S):
    """Largest sequence tile <= 256 that divides S (keeps (TS,S)/(TS,4H) bounded)."""
    for ts in (256, 128, 64, 32, 16, 8):
        if ts <= S and S % ts == 0:
            return ts
    return S


def custom_expert_layer(x, params, num_heads):
    """x: (B, S, H) float32.  params: PyTorch-layout weights (see init_params)."""
    B, S, H = x.shape
    TS = _pick_seq_tile(S)
    n_seq = S // TS
    single_tile = n_seq == 1
    weights = _prepare_params(params)

    def const_spec(shape):
        zeros = (0,) * len(shape)
        return pl.BlockSpec(shape, lambda b, t, _z=zeros: _z)

    weight_specs = [const_spec(w.shape) for w in weights]
    tile_spec = pl.BlockSpec((1, TS, H), lambda b, t: (b, t, 0))
    full_spec = pl.BlockSpec((1, S, H), lambda b, t: (b, 0, 0))
    out_spec = pl.BlockSpec((1, TS, H), lambda b, t: (b, t, 0))

    if single_tile:
        # One x input only: no duplicate (1,S,H) DMA, no duplicate LayerNorm-1.
        def kernel(x_ref, *rest):
            _expert_layer_kernel(x_ref, x_ref, *rest, num_heads=num_heads)

        in_specs = [full_spec] + weight_specs
        operands = (x, *weights)
    else:
        kernel = functools.partial(_expert_layer_kernel, num_heads=num_heads)
        in_specs = [tile_spec, full_spec] + weight_specs
        operands = (x, x, *weights)

    flops = int(B * (24 * S * H * H + 4 * S * S * H))
    transcendentals = int(B * num_heads * S * S)
    bytes_accessed = int(3 * B * S * H * 4 + 24 * H * H + 40 * H)

    return pl.pallas_call(
        kernel,
        out_shape=jax.ShapeDtypeStruct((B, S, H), x.dtype),
        grid_spec=pltpu.PrefetchScalarGridSpec(
            num_scalar_prefetch=0,
            grid=(B, n_seq),
            in_specs=in_specs,
            out_specs=out_spec,
        ),
        compiler_params=pltpu.CompilerParams(
            dimension_semantics=("parallel", "parallel"),
            vmem_limit_bytes=64 * 1024 * 1024,
        ),
        cost_estimate=pl.CostEstimate(
            flops=flops,
            transcendentals=transcendentals,
            bytes_accessed=bytes_accessed,
        ),
    )(*operands)


def init_params(key, hidden_dim):
    """Deterministic synthetic parameters in PyTorch nn.Module layout."""
    H = hidden_dim
    ks = jax.random.split(key, 6)
    std = 0.02
    return {
        "ln1_w": jnp.ones((H,), jnp.float32),
        "ln1_b": jnp.zeros((H,), jnp.float32),
        "ln2_w": jnp.ones((H,), jnp.float32),
        "ln2_b": jnp.zeros((H,), jnp.float32),
        "in_proj_w": std * jax.random.normal(ks[0], (3 * H, H), jnp.float32),
        "in_proj_b": jnp.zeros((3 * H,), jnp.float32),
        "out_proj_w": std * jax.random.normal(ks[1], (H, H), jnp.float32),
        "out_proj_b": jnp.zeros((H,), jnp.float32),
        "ffn_w1": std * jax.random.normal(ks[2], (4 * H, H), jnp.float32),
        "ffn_b1": std * jax.random.normal(ks[3], (4 * H,), jnp.float32),
        "ffn_w2": std * jax.random.normal(ks[4], (H, 4 * H), jnp.float32),
        "ffn_b2": std * jax.random.normal(ks[5], (H,), jnp.float32),
    }


if __name__ == "__main__":
    B, S, H, num_heads = 2, 8, 32, 4
    key = jax.random.PRNGKey(0)
    k_x, k_p = jax.random.split(key)
    x = jax.random.normal(k_x, (B, S, H), jnp.float32)
    params = init_params(k_p, H)

    out = custom_expert_layer(x, params, num_heads)
    jax.block_until_ready(out)
    assert out.shape == (B, S, H) and out.dtype == jnp.float32
    print("KERNEL_OK")
</pallas_src>

<mosaic_0001>
module attributes {stable_mosaic.version = 11 : i64} {
  func.func @kernel(%arg0: i32, %arg1: i32, %arg2: memref<1x8x32xf32, #tpu.memory_space<vmem>>, %arg3: memref<1x32xf32, #tpu.memory_space<vmem>>, %arg4: memref<1x32xf32, #tpu.memory_space<vmem>>, %arg5: memref<32x32xbf16, #tpu.memory_space<vmem>>, %arg6: memref<32x32xbf16, #tpu.memory_space<vmem>>, %arg7: memref<32x32xbf16, #tpu.memory_space<vmem>>, %arg8: memref<1x32xf32, #tpu.memory_space<vmem>>, %arg9: memref<1x32xf32, #tpu.memory_space<vmem>>, %arg10: memref<1x32xf32, #tpu.memory_space<vmem>>, %arg11: memref<32x32xbf16, #tpu.memory_space<vmem>>, %arg12: memref<1x32xf32, #tpu.memory_space<vmem>>, %arg13: memref<1x32xf32, #tpu.memory_space<vmem>>, %arg14: memref<1x32xf32, #tpu.memory_space<vmem>>, %arg15: memref<32x128xbf16, #tpu.memory_space<vmem>>, %arg16: memref<1x128xf32, #tpu.memory_space<vmem>>, %arg17: memref<128x32xbf16, #tpu.memory_space<vmem>>, %arg18: memref<1x32xf32, #tpu.memory_space<vmem>>, %arg19: memref<1x8x32xf32, #tpu.memory_space<vmem>>) attributes {dimension_semantics = [#tpu.dimension_semantics<parallel>, #tpu.dimension_semantics<parallel>], iteration_bounds = array<i64: 2, 1>, scalar_prefetch = 0 : i64, scratch_operands = 0 : i64, tpu.core_type = #tpu.core_type<tc>, window_params = [{transform_indices = @transform_0, window_bounds = array<i64: 1, 8, 32>}, {pipeline_mode = #tpu.pipeline_mode<synchronous>, transform_indices = @transform_1, window_bounds = array<i64: 1, 32>}, {pipeline_mode = #tpu.pipeline_mode<synchronous>, transform_indices = @transform_2, window_bounds = array<i64: 1, 32>}, {pipeline_mode = #tpu.pipeline_mode<synchronous>, transform_indices = @transform_3, window_bounds = array<i64: 32, 32>}, {pipeline_mode = #tpu.pipeline_mode<synchronous>, transform_indices = @transform_4, window_bounds = array<i64: 32, 32>}, {pipeline_mode = #tpu.pipeline_mode<synchronous>, transform_indices = @transform_5, window_bounds = array<i64: 32, 32>}, {pipeline_mode = #tpu.pipeline_mode<synchronous>, transform_indices = @transform_6, window_bounds = array<i64: 1, 32>}, {pipeline_mode = #tpu.pipeline_mode<synchronous>, transform_indices = @transform_7, window_bounds = array<i64: 1, 32>}, {pipeline_mode = #tpu.pipeline_mode<synchronous>, transform_indices = @transform_8, window_bounds = array<i64: 1, 32>}, {pipeline_mode = #tpu.pipeline_mode<synchronous>, transform_indices = @transform_9, window_bounds = array<i64: 32, 32>}, {pipeline_mode = #tpu.pipeline_mode<synchronous>, transform_indices = @transform_10, window_bounds = array<i64: 1, 32>}, {pipeline_mode = #tpu.pipeline_mode<synchronous>, transform_indices = @transform_11, window_bounds = array<i64: 1, 32>}, {pipeline_mode = #tpu.pipeline_mode<synchronous>, transform_indices = @transform_12, window_bounds = array<i64: 1, 32>}, {pipeline_mode = #tpu.pipeline_mode<synchronous>, transform_indices = @transform_13, window_bounds = array<i64: 32, 128>}, {pipeline_mode = #tpu.pipeline_mode<synchronous>, transform_indices = @transform_14, window_bounds = array<i64: 1, 128>}, {pipeline_mode = #tpu.pipeline_mode<synchronous>, transform_indices = @transform_15, window_bounds = array<i64: 128, 32>}, {pipeline_mode = #tpu.pipeline_mode<synchronous>, transform_indices = @transform_16, window_bounds = array<i64: 1, 32>}, {transform_indices = @transform_17, window_bounds = array<i64: 1, 8, 32>}]} {
    %c0 = arith.constant 0 : index
    %c0_0 = arith.constant 0 : index
    %c0_1 = arith.constant 0 : index
    %0 = vector.load %arg2[%c0, %c0_0, %c0_1] : memref<1x8x32xf32, #tpu.memory_space<vmem>>, vector<1x8x32xf32>
    %1 = vector.shape_cast %0 : vector<1x8x32xf32> to vector<8x32xf32>
    %c0_2 = arith.constant 0 : index
    %c0_3 = arith.constant 0 : index
    %2 = vector.load %arg3[%c0_2, %c0_3] : memref<1x32xf32, #tpu.memory_space<vmem>>, vector<1x32xf32>
    %c0_4 = arith.constant 0 : index
    %c0_5 = arith.constant 0 : index
    %3 = vector.load %arg4[%c0_4, %c0_5] : memref<1x32xf32, #tpu.memory_space<vmem>>, vector<1x32xf32>
    %cst = arith.constant dense<0.000000e+00> : vector<8xf32>
    %4 = vector.multi_reduction <add>, %1, %cst [1] : vector<8x32xf32> to vector<8xf32>
    %5 = vector.shape_cast %4 : vector<8xf32> to vector<8x1xf32>
    %cst_6 = arith.constant 3.200000e+01 : f32
    %6 = vector.broadcast %cst_6 : f32 to vector<8x1xf32>
    %7 = arith.divf %5, %6 : vector<8x1xf32>
    %8 = vector.broadcast %7 : vector<8x1xf32> to vector<8x32xf32>
    %9 = arith.subf %1, %8 : vector<8x32xf32>
    %10 = arith.mulf %9, %9 : vector<8x32xf32>
    %cst_7 = arith.constant dense<0.000000e+00> : vector<8xf32>
    %11 = vector.multi_reduction <add>, %10, %cst_7 [1] : vector<8x32xf32> to vector<8xf32>
    %12 = vector.shape_cast %11 : vector<8xf32> to vector<8x1xf32>
    %cst_8 = arith.constant 3.200000e+01 : f32
    %13 = vector.broadcast %cst_8 : f32 to vector<8x1xf32>
    %14 = arith.divf %12, %13 : vector<8x1xf32>
    %15 = vector.broadcast %7 : vector<8x1xf32> to vector<8x32xf32>
    %16 = arith.subf %1, %15 : vector<8x32xf32>
    %cst_9 = arith.constant 9.99999974E-6 : f32
    %17 = vector.broadcast %cst_9 : f32 to vector<8x1xf32>
    %18 = arith.addf %14, %17 : vector<8x1xf32>
    %19 = math.rsqrt %18 : vector<8x1xf32>
    %20 = vector.broadcast %19 : vector<8x1xf32> to vector<8x32xf32>
    %21 = arith.mulf %16, %20 : vector<8x32xf32>
    %22 = vector.broadcast %2 : vector<1x32xf32> to vector<8x32xf32>
    %23 = arith.mulf %21, %22 : vector<8x32xf32>
    %24 = vector.broadcast %3 : vector<1x32xf32> to vector<8x32xf32>
    %25 = arith.addf %23, %24 : vector<8x32xf32>
    %26 = arith.truncf %25 : vector<8x32xf32> to vector<8x32xbf16>
    %c0_10 = arith.constant 0 : index
    %c0_11 = arith.constant 0 : index
    %27 = vector.load %arg5[%c0_10, %c0_11] : memref<32x32xbf16, #tpu.memory_space<vmem>>, vector<32x32xbf16>
    %cst_12 = arith.constant dense<0.000000e+00> : vector<8x32xf32>
    %28 = tpu.matmul %26, %27, %cst_12 {dimension_numbers = #tpu.dot_dimension_numbers<[1], [0], [0], [1], [0, 0, 1, 1], [], []>} : vector<8x32xbf16>, vector<32x32xbf16>, vector<8x32xf32> -> vector<8x32xf32>
    %c0_13 = arith.constant 0 : index
    %c0_14 = arith.constant 0 : index
    %29 = vector.load %arg8[%c0_13, %c0_14] : memref<1x32xf32, #tpu.memory_space<vmem>>, vector<1x32xf32>
    %30 = vector.broadcast %29 : vector<1x32xf32> to vector<8x32xf32>
    %31 = arith.addf %28, %30 : vector<8x32xf32>
    %c0_15 = arith.constant 0 : index
    %c0_16 = arith.constant 0 : index
    %32 = vector.load %arg6[%c0_15, %c0_16] : memref<32x32xbf16, #tpu.memory_space<vmem>>, vector<32x32xbf16>
    %cst_17 = arith.constant dense<0.000000e+00> : vector<8x32xf32>
    %33 = tpu.matmul %26, %32, %cst_17 {dimension_numbers = #tpu.dot_dimension_numbers<[1], [0], [0], [1], [0, 0, 1, 1], [], []>} : vector<8x32xbf16>, vector<32x32xbf16>, vector<8x32xf32> -> vector<8x32xf32>
    %c0_18 = arith.constant 0 : index
    %c0_19 = arith.constant 0 : index
    %34 = vector.load %arg9[%c0_18, %c0_19] : memref<1x32xf32, #tpu.memory_space<vmem>>, vector<1x32xf32>
    %35 = vector.broadcast %34 : vector<1x32xf32> to vector<8x32xf32>
    %36 = arith.addf %33, %35 : vector<8x32xf32>
    %c0_20 = arith.constant 0 : index
    %c0_21 = arith.constant 0 : index
    %37 = vector.load %arg7[%c0_20, %c0_21] : memref<32x32xbf16, #tpu.memory_space<vmem>>, vector<32x32xbf16>
    %cst_22 = arith.constant dense<0.000000e+00> : vector<8x32xf32>
    %38 = tpu.matmul %26, %37, %cst_22 {dimension_numbers = #tpu.dot_dimension_numbers<[1], [0], [0], [1], [0, 0, 1, 1], [], []>} : vector<8x32xbf16>, vector<32x32xbf16>, vector<8x32xf32> -> vector<8x32xf32>
    %c0_23 = arith.constant 0 : index
    %c0_24 = arith.constant 0 : index
    %39 = vector.load %arg10[%c0_23, %c0_24] : memref<1x32xf32, #tpu.memory_space<vmem>>, vector<1x32xf32>
    %40 = vector.broadcast %39 : vector<1x32xf32> to vector<8x32xf32>
    %41 = arith.addf %38, %40 : vector<8x32xf32>
    %cst_25 = arith.constant 0.353553385 : f32
    %42 = vector.broadcast %cst_25 : f32 to vector<8x32xf32>
    %43 = arith.mulf %31, %42 : vector<8x32xf32>
    %44 = vector.shape_cast %43 : vector<8x32xf32> to vector<8x4x8xf32>
    %45 = tpu.transpose %44, [1, 0, 2] : vector<8x4x8xf32> -> vector<4x8x8xf32>
    %46 = arith.truncf %45 : vector<4x8x8xf32> to vector<4x8x8xbf16>
    %47 = vector.shape_cast %36 : vector<8x32xf32> to vector<8x4x8xf32>
    %48 = tpu.transpose %47, [1, 0, 2] : vector<8x4x8xf32> -> vector<4x8x8xf32>
    %49 = arith.truncf %48 : vector<4x8x8xf32> to vector<4x8x8xbf16>
    %50 = vector.shape_cast %41 : vector<8x32xf32> to vector<8x4x8xf32>
    %51 = tpu.transpose %50, [1, 0, 2] : vector<8x4x8xf32> -> vector<4x8x8xf32>
    %52 = arith.truncf %51 : vector<4x8x8xf32> to vector<4x8x8xbf16>
    "tpu.trace_start"() <{level = 10 : i32, message = "htd,hkd->htk"}> : () -> ()
    %cst_26 = arith.constant dense<0.000000e+00> : vector<4x8x8xf32>
    %53 = tpu.matmul %46, %49, %cst_26 {dimension_numbers = #tpu.dot_dimension_numbers<[2], [2], [1], [1], [0, 0, 0, 1, 1, 1], [0], [0]>} : vector<4x8x8xbf16>, vector<4x8x8xbf16>, vector<4x8x8xf32> -> vector<4x8x8xf32>
    "tpu.trace_stop"() : () -> ()
    %cst_27 = arith.constant dense<0xFF800000> : vector<4x8xf32>
    %54 = vector.multi_reduction <maximumf>, %53, %cst_27 [2] : vector<4x8x8xf32> to vector<4x8xf32>
    %55 = vector.shape_cast %54 : vector<4x8xf32> to vector<4x8x1xf32>
    %56 = vector.broadcast %55 : vector<4x8x1xf32> to vector<4x8x8xf32>
    %57 = arith.subf %53, %56 : vector<4x8x8xf32>
    %58 = math.exp %57 : vector<4x8x8xf32>
    %cst_28 = arith.constant dense<0.000000e+00> : vector<4x8xf32>
    %59 = vector.multi_reduction <add>, %58, %cst_28 [2] : vector<4x8x8xf32> to vector<4x8xf32>
    %60 = vector.shape_cast %59 : vector<4x8xf32> to vector<4x8x1xf32>
    %61 = tpu.reciprocal %60 {approx = true} : vector<4x8x1xf32> -> vector<4x8x1xf32>
    %62 = arith.truncf %58 : vector<4x8x8xf32> to vector<4x8x8xbf16>
    "tpu.trace_start"() <{level = 10 : i32, message = "htk,hkd->htd"}> : () -> ()
    %cst_29 = arith.constant dense<0.000000e+00> : vector<4x8x8xf32>
    %63 = tpu.matmul %62, %52, %cst_29 {dimension_numbers = #tpu.dot_dimension_numbers<[2], [1], [1], [2], [0, 0, 0, 1, 1, 2], [0], [0]>} : vector<4x8x8xbf16>, vector<4x8x8xbf16>, vector<4x8x8xf32> -> vector<4x8x8xf32>
    "tpu.trace_stop"() : () -> ()
    %64 = vector.broadcast %61 : vector<4x8x1xf32> to vector<4x8x8xf32>
    %65 = arith.mulf %63, %64 : vector<4x8x8xf32>
    %66 = tpu.transpose %65, [1, 0, 2] : vector<4x8x8xf32> -> vector<8x4x8xf32>
    %67 = vector.shape_cast %66 : vector<8x4x8xf32> to vector<8x32xf32>
    %68 = arith.truncf %67 : vector<8x32xf32> to vector<8x32xbf16>
    %c0_30 = arith.constant 0 : index
    %c0_31 = arith.constant 0 : index
    %69 = vector.load %arg11[%c0_30, %c0_31] : memref<32x32xbf16, #tpu.memory_space<vmem>>, vector<32x32xbf16>
    %cst_32 = arith.constant dense<0.000000e+00> : vector<8x32xf32>
    %70 = tpu.matmul %68, %69, %cst_32 {dimension_numbers = #tpu.dot_dimension_numbers<[1], [0], [0], [1], [0, 0, 1, 1], [], []>} : vector<8x32xbf16>, vector<32x32xbf16>, vector<8x32xf32> -> vector<8x32xf32>
    %c0_33 = arith.constant 0 : index
    %c0_34 = arith.constant 0 : index
    %71 = vector.load %arg12[%c0_33, %c0_34] : memref<1x32xf32, #tpu.memory_space<vmem>>, vector<1x32xf32>
    %72 = vector.broadcast %71 : vector<1x32xf32> to vector<8x32xf32>
    %73 = arith.addf %70, %72 : vector<8x32xf32>
    %74 = arith.addf %1, %73 : vector<8x32xf32>
    %c0_35 = arith.constant 0 : index
    %c0_36 = arith.constant 0 : index
    %75 = vector.load %arg13[%c0_35, %c0_36] : memref<1x32xf32, #tpu.memory_space<vmem>>, vector<1x32xf32>
    %c0_37 = arith.constant 0 : index
    %c0_38 = arith.constant 0 : index
    %76 = vector.load %arg14[%c0_37, %c0_38] : memref<1x32xf32, #tpu.memory_space<vmem>>, vector<1x32xf32>
    %cst_39 = arith.constant dense<0.000000e+00> : vector<8xf32>
    %77 = vector.multi_reduction <add>, %74, %cst_39 [1] : vector<8x32xf32> to vector<8xf32>
    %78 = vector.shape_cast %77 : vector<8xf32> to vector<8x1xf32>
    %cst_40 = arith.constant 3.200000e+01 : f32
    %79 = vector.broadcast %cst_40 : f32 to vector<8x1xf32>
    %80 = arith.divf %78, %79 : vector<8x1xf32>
    %81 = vector.broadcast %80 : vector<8x1xf32> to vector<8x32xf32>
    %82 = arith.subf %74, %81 : vector<8x32xf32>
    %83 = arith.mulf %82, %82 : vector<8x32xf32>
    %cst_41 = arith.constant dense<0.000000e+00> : vector<8xf32>
    %84 = vector.multi_reduction <add>, %83, %cst_41 [1] : vector<8x32xf32> to vector<8xf32>
    %85 = vector.shape_cast %84 : vector<8xf32> to vector<8x1xf32>
    %cst_42 = arith.constant 3.200000e+01 : f32
    %86 = vector.broadcast %cst_42 : f32 to vector<8x1xf32>
    %87 = arith.divf %85, %86 : vector<8x1xf32>
    %88 = vector.broadcast %80 : vector<8x1xf32> to vector<8x32xf32>
    %89 = arith.subf %74, %88 : vector<8x32xf32>
    %cst_43 = arith.constant 9.99999974E-6 : f32
    %90 = vector.broadcast %cst_43 : f32 to vector<8x1xf32>
    %91 = arith.addf %87, %90 : vector<8x1xf32>
    %92 = math.rsqrt %91 : vector<8x1xf32>
    %93 = vector.broadcast %92 : vector<8x1xf32> to vector<8x32xf32>
    %94 = arith.mulf %89, %93 : vector<8x32xf32>
    %95 = vector.broadcast %75 : vector<1x32xf32> to vector<8x32xf32>
    %96 = arith.mulf %94, %95 : vector<8x32xf32>
    %97 = vector.broadcast %76 : vector<1x32xf32> to vector<8x32xf32>
    %98 = arith.addf %96, %97 : vector<8x32xf32>
    %99 = arith.truncf %98 : vector<8x32xf32> to vector<8x32xbf16>
    %c0_44 = arith.constant 0 : index
    %c0_45 = arith.constant 0 : index
    %100 = vector.load %arg15[%c0_44, %c0_45] : memref<32x128xbf16, #tpu.memory_space<vmem>>, vector<32x128xbf16>
    %cst_46 = arith.constant dense<0.000000e+00> : vector<8x128xf32>
    %101 = tpu.matmul %99, %100, %cst_46 {dimension_numbers = #tpu.dot_dimension_numbers<[1], [0], [0], [1], [0, 0, 1, 1], [], []>} : vector<8x32xbf16>, vector<32x128xbf16>, vector<8x128xf32> -> vector<8x128xf32>
    %c0_47 = arith.constant 0 : index
    %c0_48 = arith.constant 0 : index
    %102 = vector.load %arg16[%c0_47, %c0_48] : memref<1x128xf32, #tpu.memory_space<vmem>>, vector<1x128xf32>
    %103 = vector.broadcast %102 : vector<1x128xf32> to vector<8x128xf32>
    %104 = arith.addf %101, %103 : vector<8x128xf32>
    %cst_49 = arith.constant 0.000000e+00 : f32
    %105 = vector.broadcast %cst_49 : f32 to vector<8x128xf32>
    %106 = arith.maximumf %104, %105 : vector<8x128xf32>
    %107 = arith.truncf %106 : vector<8x128xf32> to vector<8x128xbf16>
    %c0_50 = arith.constant 0 : index
    %c0_51 = arith.constant 0 : index
    %108 = vector.load %arg17[%c0_50, %c0_51] : memref<128x32xbf16, #tpu.memory_space<vmem>>, vector<128x32xbf16>
    %cst_52 = arith.constant dense<0.000000e+00> : vector<8x32xf32>
    %109 = tpu.matmul %107, %108, %cst_52 {dimension_numbers = #tpu.dot_dimension_numbers<[1], [0], [0], [1], [0, 0, 1, 1], [], []>} : vector<8x128xbf16>, vector<128x32xbf16>, vector<8x32xf32> -> vector<8x32xf32>
    %c0_53 = arith.constant 0 : index
    %c0_54 = arith.constant 0 : index
    %110 = vector.load %arg18[%c0_53, %c0_54] : memref<1x32xf32, #tpu.memory_space<vmem>>, vector<1x32xf32>
    %111 = vector.broadcast %110 : vector<1x32xf32> to vector<8x32xf32>
    %112 = arith.addf %109, %111 : vector<8x32xf32>
    %113 = arith.addf %74, %112 : vector<8x32xf32>
    %c0_55 = arith.constant 0 : index
    %c0_56 = arith.constant 0 : index
    %c0_57 = arith.constant 0 : index
    %114 = vector.load %arg19[%c0_55, %c0_56, %c0_57] : memref<1x8x32xf32, #tpu.memory_space<vmem>>, vector<1x8x32xf32>
    %115 = vector.shape_cast %114 : vector<1x8x32xf32> to vector<8x32xf32>
    %116 = vector.shape_cast %113 : vector<8x32xf32> to vector<1x8x32xf32>
    tpu.vector_store %arg19[%c0_55, %c0_56, %c0_57], %116 {strides = array<i32>} : memref<1x8x32xf32, #tpu.memory_space<vmem>>, vector<1x8x32xf32>,
    return
  }
  func.func @transform_0(%arg0: i32, %arg1: i32) -> (i32, i32, i32) {
    %c0_i32 = arith.constant 0 : i32
    %c0_i32_0 = arith.constant 0 : i32
    %c0_i32_1 = arith.constant 0 : i32
    return %arg0, %c0_i32, %c0_i32_0 : i32, i32, i32
  }
  func.func @transform_1(%arg0: i32, %arg1: i32) -> (i32, i32) {
    %c0_i32 = arith.constant 0 : i32
    %c0_i32_0 = arith.constant 0 : i32
    %c0_i32_1 = arith.constant 0 : i32
    return %c0_i32, %c0_i32_0 : i32, i32
  }
  func.func @transform_2(%arg0: i32, %arg1: i32) -> (i32, i32) {
    %c0_i32 = arith.constant 0 : i32
    %c0_i32_0 = arith.constant 0 : i32
    %c0_i32_1 = arith.constant 0 : i32
    return %c0_i32, %c0_i32_0 : i32, i32
  }
  func.func @transform_3(%arg0: i32, %arg1: i32) -> (i32, i32) {
    %c0_i32 = arith.constant 0 : i32
    %c0_i32_0 = arith.constant 0 : i32
    %c0_i32_1 = arith.constant 0 : i32
    return %c0_i32, %c0_i32_0 : i32, i32
  }
  func.func @transform_4(%arg0: i32, %arg1: i32) -> (i32, i32) {
    %c0_i32 = arith.constant 0 : i32
    %c0_i32_0 = arith.constant 0 : i32
    %c0_i32_1 = arith.constant 0 : i32
    return %c0_i32, %c0_i32_0 : i32, i32
  }
  func.func @transform_5(%arg0: i32, %arg1: i32) -> (i32, i32) {
    %c0_i32 = arith.constant 0 : i32
    %c0_i32_0 = arith.constant 0 : i32
    %c0_i32_1 = arith.constant 0 : i32
    return %c0_i32, %c0_i32_0 : i32, i32
  }
  func.func @transform_6(%arg0: i32, %arg1: i32) -> (i32, i32) {
    %c0_i32 = arith.constant 0 : i32
    %c0_i32_0 = arith.constant 0 : i32
    %c0_i32_1 = arith.constant 0 : i32
    return %c0_i32, %c0_i32_0 : i32, i32
  }
  func.func @transform_7(%arg0: i32, %arg1: i32) -> (i32, i32) {
    %c0_i32 = arith.constant 0 : i32
    %c0_i32_0 = arith.constant 0 : i32
    %c0_i32_1 = arith.constant 0 : i32
    return %c0_i32, %c0_i32_0 : i32, i32
  }
  func.func @transform_8(%arg0: i32, %arg1: i32) -> (i32, i32) {
    %c0_i32 = arith.constant 0 : i32
    %c0_i32_0 = arith.constant 0 : i32
    %c0_i32_1 = arith.constant 0 : i32
    return %c0_i32, %c0_i32_0 : i32, i32
  }
  func.func @transform_9(%arg0: i32, %arg1: i32) -> (i32, i32) {
    %c0_i32 = arith.constant 0 : i32
    %c0_i32_0 = arith.constant 0 : i32
    %c0_i32_1 = arith.constant 0 : i32
    return %c0_i32, %c0_i32_0 : i32, i32
  }
  func.func @transform_10(%arg0: i32, %arg1: i32) -> (i32, i32) {
    %c0_i32 = arith.constant 0 : i32
    %c0_i32_0 = arith.constant 0 : i32
    %c0_i32_1 = arith.constant 0 : i32
    return %c0_i32, %c0_i32_0 : i32, i32
  }
  func.func @transform_11(%arg0: i32, %arg1: i32) -> (i32, i32) {
    %c0_i32 = arith.constant 0 : i32
    %c0_i32_0 = arith.constant 0 : i32
    %c0_i32_1 = arith.constant 0 : i32
    return %c0_i32, %c0_i32_0 : i32, i32
  }
  func.func @transform_12(%arg0: i32, %arg1: i32) -> (i32, i32) {
    %c0_i32 = arith.constant 0 : i32
    %c0_i32_0 = arith.constant 0 : i32
    %c0_i32_1 = arith.constant 0 : i32
    return %c0_i32, %c0_i32_0 : i32, i32
  }
  func.func @transform_13(%arg0: i32, %arg1: i32) -> (i32, i32) {
    %c0_i32 = arith.constant 0 : i32
    %c0_i32_0 = arith.constant 0 : i32
    %c0_i32_1 = arith.constant 0 : i32
    return %c0_i32, %c0_i32_0 : i32, i32
  }
  func.func @transform_14(%arg0: i32, %arg1: i32) -> (i32, i32) {
    %c0_i32 = arith.constant 0 : i32
    %c0_i32_0 = arith.constant 0 : i32
    %c0_i32_1 = arith.constant 0 : i32
    return %c0_i32, %c0_i32_0 : i32, i32
  }
  func.func @transform_15(%arg0: i32, %arg1: i32) -> (i32, i32) {
    %c0_i32 = arith.constant 0 : i32
    %c0_i32_0 = arith.constant 0 : i32
    %c0_i32_1 = arith.constant 0 : i32
    return %c0_i32, %c0_i32_0 : i32, i32
  }
  func.func @transform_16(%arg0: i32, %arg1: i32) -> (i32, i32) {
    %c0_i32 = arith.constant 0 : i32
    %c0_i32_0 = arith.constant 0 : i32
    %c0_i32_1 = arith.constant 0 : i32
    return %c0_i32, %c0_i32_0 : i32, i32
  }
  func.func @transform_17(%arg0: i32, %arg1: i32) -> (i32, i32, i32) {
    %c0_i32 = arith.constant 0 : i32
    %c0_i32_0 = arith.constant 0 : i32
    return %arg0, %arg1, %c0_i32 : i32, i32, i32
  }
}

</mosaic_0001>

<bundles_post_ra>
// kernel: tpu_custom_call.1
= control target key start
LH: loop header
LB: loop body
LE: loop exit
PB: predicated region body
PF: predicated region fallthrough
CT: control target
= control target key end

     0   :  { %s4530_s0 = inlined_call_operand.hbm [shape: f32[2,8,32], index: 0, kind: input, shape index: {}]   ;;  %s4531_s1 = inlined_call_operand.hbm [shape: f32[1,32], index: 1, kind: input, shape index: {}]   ;;  %s4532_s2 = inlined_call_operand.hbm [shape: f32[1,32], index: 2, kind: input, shape index: {}]   ;;  %s4533_s3 = inlined_call_operand.hbm [shape: bf16[32,32], index: 3, kind: input, shape index: {}]   ;;  %s4534_s4 = inlined_call_operand.hbm [shape: bf16[32,32], index: 4, kind: input, shape index: {}]   ;;  %s4535_s5 = inlined_call_operand.hbm [shape: bf16[32,32], index: 5, kind: input, shape index: {}]   ;;  %s4536_s6 = inlined_call_operand.hbm [shape: f32[1,32], index: 6, kind: input, shape index: {}]   ;;  %s4537_s7 = inlined_call_operand.hbm [shape: f32[1,32], index: 7, kind: input, shape index: {}]   ;;  %s4538_s8 = inlined_call_operand.hbm [shape: f32[1,32], index: 8, kind: input, shape index: {}]   ;;  %s4539_s9 = inlined_call_operand.hbm [shape: bf16[32,32], index: 9, kind: input, shape index: {}]   ;;  %s4540_s10 = inlined_call_operand.hbm [shape: f32[1,32], index: 10, kind: input, shape index: {}]   ;;  %s4541_s11 = inlined_call_operand.hbm [shape: f32[1,32], index: 11, kind: input, shape index: {}]   ;;  %s4542_s12 = inlined_call_operand.hbm [shape: f32[1,32], index: 12, kind: input, shape index: {}]   ;;  %s4543_s13 = inlined_call_operand.hbm [shape: bf16[32,128], index: 13, kind: input, shape index: {}]   ;;  %s4544_s14 = inlined_call_operand.hbm [shape: f32[1,128], index: 14, kind: input, shape index: {}]   ;;  %s4545_s15 = inlined_call_operand.hbm [shape: bf16[128,32], index: 15, kind: input, shape index: {}]   ;;  %s4546_s16 = inlined_call_operand.hbm [shape: f32[1,32], index: 16, kind: input, shape index: {}]   ;;  %s4547_s17 = inlined_call_operand.hbm [shape: f32[2,8,32], index: 17, kind: output, shape index: {}]  }
   0x1   :  { %4566 = sst [smem:[#allocation48_spill]] %s4530_s0 }
   0x2   :  { %4567 = sst [smem:[#allocation49_spill]] %s4531_s1 }
   0x3   :  { %4568 = sst [smem:[#allocation50_spill]] %s4532_s2 }
   0x4   :  { %4569 = sst [smem:[#allocation51_spill]] %s4533_s3 }
   0x5   :  { %4570 = sst [smem:[#allocation52_spill]] %s4534_s4 }
   0x6   :  { %4571 = sst [smem:[#allocation53_spill]] %s4547_s17 }
   0x7   :  { %22 = vsyncpa [#allocation3], 0 }
   0x8   :  { %24 = vsyncpa [#allocation3 + $0x1], 0 }
   0x9   :  { %25 = vsyncpa [#allocation6], 0 }
   0xa   :  { %26 = vsyncpa [#allocation9], 0 }
   0xb   :  { %27 = vsyncpa [#allocation12], 0 }
   0xc   :  { %28 = vsyncpa [#allocation15], 0 }
   0xd   :  { %29 = vsyncpa [#allocation18], 0 }
   0xe   :  { %30 = vsyncpa [#allocation21], 0 }
   0xf   :  { %31 = vsyncpa [#allocation24], 0 }
  0x10   :  { %32 = vsyncpa [#allocation27], 0 }
  0x11   :  { %33 = vsyncpa [#allocation4], 0 }
  0x12   :  { %35 = vsyncpa [#allocation4 + $0x1], 0  ;;  %s3792_s24 = smov 0   ;;  %s3794_s25 = smov 0  }
  0x13   :  { %s3796_s26 = smov 0   ;;  %s3798_s27 = smov 0  }
  0x14   :  { %s3800_s28 = smov 0   ;;  %s3802_s29 = smov 0  }
  0x15 LB: > { %4572 = sst [smem:[#allocation40_spill]] %s3650_s24  ;;  %s4550_s0 = sadd.s32 4294967295, %s3670_s29   ;;  %s3670_s29 = sphi %s3802_s29, %s41_s29   ;;  %s3666_s28 = sphi %s3800_s28, %s4618_s28   ;;  %s3662_s27 = sphi %s3798_s27, %s4616_s27   ;;  %s3658_s26 = sphi %s3796_s26, %s4617_s26   ;;  %s3654_s25 = sphi %s3794_s25, %s4615_s25   ;;  %s3650_s24 = sphi %s3792_s24, %s4614_s24  }
  0x16   : > { %4573 = sst [smem:[#allocation41_spill]] %s3654_s25  ;;  %p2565_p0 = scmp.ge.s32.totalorder %s3670_s29, 1 }
  0x17   : > { %4574 = sst [smem:[#allocation42_spill]] %s3658_s26  ;;  %p3826_p1 = scmp.eq.s32.totalorder %s4550_s0, 0 }
  0x18   : > { %4575 = sst [smem:[#allocation43_spill]] %s3662_s27  ;;  %p448_p2 = scmp.lt.s32.totalorder %s3670_s29, 3 }
  0x19   : > { %4576 = sst [smem:[#allocation44_spill]] %s3666_s28  ;;  %s3672_s19 = smov [#allocation5]  }
  0x1a   : > { %4577 = sst [smem:[#allocation45_spill]] %s3670_s29  ;;  %p3831_p3 = pnand %p2565_p0, %p448_p2 }
  0x1b   : > { %s4578_s30 = scalar_select %p3826_p1, 1, 0 }
  0x1c   : > { %s4580_s18 = scalar_select %p3831_p3, 1, 0 }
  0x1d   : > { %4579 = sst [smem:[#allocation46_spill]] %s4578_s30  ;;  %s461_s1 = sshll.u32 %s3672_s19, 4  ;;  %s462_s1 = int_to_ptr.vmem [resolvable:$true] %s461_s1 }
  0x1e   : > { %4581 = sst [smem:[#allocation47_spill]] %s4580_s18  ;;  %p2873_p5 = pneg %p3831_p3 }
  0x1f   : > { %s3673_s20 = smov [#allocation8]   ;;  %s3674_s23 = smov [#allocation11]  }
  0x20   : > { %s482_s21 = sshll.u32 %s3673_s20, 4  ;;  %p3840_p6 = pnand %p2873_p5, %p3826_p1  ;;  %s3844_s21 = int_to_ptr.vmem [resolvable:$true] %s482_s21 }
  0x21   : > { %s3846_s0 = sshll.u32 %s3674_s23, 4  ;;  %s4583_s19 = sld [smem:[#allocation49_spill]]  ;;  %s509_s0 = int_to_ptr.vmem [resolvable:$true] %s3846_s0 }
  0x22   : > { %p3856_p8 = pneg %p3840_p6 }
  0x27   : > { %s3078_s24 = scalar_lea.hbm %s4583_s19, 16 }
  0x28   : > { %p3079_p7 = scmp.ne.s32.totalorder %s4583_s19, %s3078_s24  ;;  %p3085_p11 = scmp.lt.u32.totalorder %s3078_s24, %s4583_s19 }
  0x2a   : > { %p3081_p9 = pnand %p3856_p8, %p3079_p7 }
  0x2c   : > { %p3082_p10 = pneg %p3081_p9 }
  0x2e   : > { %p3087_p12 = pnand %p3085_p11, %p3082_p10 }
  0x30   : > { %3090 = shalt.err (!%p3087_p12)
}
  0x31   : > { %s3091_s17 = scalar_lea.vmem %s462_s1, 16  ;;  %s3098_s25 = scalar_lea.vmem %s462_s1, 32 }
  0x32   : > { %p3092_p13 = scmp.ne.s32.totalorder %s462_s1, %s3091_s17  ;;  %p3099_p5 = scmp.lt.s32.totalorder %s462_s1, %s462_s1 }
  0x33   : > { %p3100_p4 = scmp.lt.s32.totalorder %s3098_s25, %s3091_s17 }
  0x34   : > { %p3094_p0 = pnand %p3092_p13, %p3856_p8 }
  0x35   : > { %p3101_p3 = por %p3100_p4, %p3099_p5 }
  0x36   : > { %p3095_p2 = pneg %p3094_p0 }
  0x38   : > { %p3102_p1 = pnand %p3101_p3, %p3095_p2 }
  0x3a   : > { %3105 = shalt.err (!%p3102_p1)
}
  0x3b   : > { %2876 = dma.hbm_to_vmem [thread:$0]  (!%p3840_p6), %s4583_s19, 16, %s462_s1, [#allocation6]  }
  0x3c   : > { %s4585_s3 = sld [smem:[#allocation51_spill]] }
  0x42   : > { %s3106_s23 = scalar_lea.hbm %s4585_s3, 256 }
  0x43   : > { %p3107_p7 = scmp.ne.s32.totalorder %s4585_s3, %s3106_s23  ;;  %p3113_p1 = scmp.lt.u32.totalorder %s3106_s23, %s4585_s3 }
  0x45   : > { %p3109_p9 = pnand %p3107_p7, %p3856_p8 }
  0x47   : > { %p3110_p4 = pneg %p3109_p9 }
  0x49   : > { %p3115_p3 = pnand %p3113_p1, %p3110_p4 }
  0x4b   : > { %3118 = shalt.err (!%p3115_p3)
}
  0x4c   : > { %s3119_s1 = scalar_lea.vmem %s3844_s21, 256  ;;  %p3127_p13 = scmp.lt.s32.totalorder %s3844_s21, %s3844_s21 }
  0x4d   : > { %p3120_p10 = scmp.ne.s32.totalorder %s3844_s21, %s3119_s1  ;;  %p3128_p0 = scmp.lt.s32.totalorder %s3119_s1, %s3119_s1 }
  0x4f   : > { %p3122_p11 = pnand %p3120_p10, %p3856_p8  ;;  %p3129_p2 = por %p3128_p0, %p3127_p13 }
  0x51   : > { %p3123_p12 = pneg %p3122_p11 }
  0x53   : > { %p3130_p5 = pnand %p3129_p2, %p3123_p12 }
  0x55   : > { %3133 = shalt.err (!%p3130_p5)
}
  0x56   : > { %s3675_s26 = smov 64   ;;  %s3676_s28 = smov 4  }
  0x57   : > { %2882 = dma.hbm_to_vmem [thread:$0]  (!%p3840_p6), %s4585_s3, 256, %s3844_s21, [#allocation9], %s3675_s26, %s3675_s26, %s3676_s28  }
  0x58   : > { %s3134_s23 = scalar_lea.hbm %s4535_s5, 256 }
  0x59   : > { %p3135_p7 = scmp.ne.s32.totalorder %s4535_s5, %s3134_s23  ;;  %p3141_p1 = scmp.lt.u32.totalorder %s3134_s23, %s4535_s5 }
  0x5b   : > { %p3137_p9 = pnand %p3135_p7, %p3856_p8 }
  0x5d   : > { %p3138_p4 = pneg %p3137_p9 }
  0x5f   : > { %p3143_p3 = pnand %p3141_p1, %p3138_p4 }
  0x61   : > { %3146 = shalt.err (!%p3143_p3)
}
  0x62   : > { %s3147_s27 = scalar_lea.vmem %s509_s0, 256  ;;  %p3155_p13 = scmp.lt.s32.totalorder %s509_s0, %s509_s0 }
  0x63   : > { %p3148_p10 = scmp.ne.s32.totalorder %s509_s0, %s3147_s27  ;;  %p3156_p0 = scmp.lt.s32.totalorder %s3147_s27, %s3147_s27 }
  0x65   : > { %p3150_p11 = pnand %p3148_p10, %p3856_p8  ;;  %p3157_p2 = por %p3156_p0, %p3155_p13 }
  0x67   : > { %p3151_p12 = pneg %p3150_p11 }
  0x69   : > { %p3158_p5 = pnand %p3157_p2, %p3151_p12 }
  0x6b   : > { %3161 = shalt.err (!%p3158_p5)
}
  0x6c   : > { %2888 = dma.hbm_to_vmem [thread:$0]  (!%p3840_p6), %s4535_s5, 256, %s509_s0, [#allocation12], %s3675_s26, %s3675_s26, %s3676_s28  }
  0x6d   : > { %s3677_s18 = smov [#allocation14]   ;;  %s3678_s30 = smov [#allocation17]  }
  0x6e   : > { %s533_s24 = sshll.u32 %s3677_s18, 4  ;;  %s554_s23 = sshll.u32 %s3678_s30, 4  ;;  %s534_s24 = int_to_ptr.vmem [resolvable:$true] %s533_s24  ;;  %s555_s23 = int_to_ptr.vmem [resolvable:$true] %s554_s23 }
  0x6f   : > { %s3162_s1 = scalar_lea.hbm %s4537_s7, 16 }
  0x70   : > { %p3163_p7 = scmp.ne.s32.totalorder %s4537_s7, %s3162_s1  ;;  %p3169_p1 = scmp.lt.u32.totalorder %s3162_s1, %s4537_s7 }
  0x72   : > { %p3165_p9 = pnand %p3163_p7, %p3856_p8 }
  0x74   : > { %p3166_p4 = pneg %p3165_p9 }
  0x76   : > { %p3171_p3 = pnand %p3169_p1, %p3166_p4 }
  0x78   : > { %3174 = shalt.err (!%p3171_p3)
}
  0x79   : > { %s3175_s0 = scalar_lea.vmem %s534_s24, 16  ;;  %s3182_s19 = scalar_lea.vmem %s534_s24, 32 }
  0x7a   : > { %p3176_p10 = scmp.ne.s32.totalorder %s534_s24, %s3175_s0  ;;  %p3183_p13 = scmp.lt.s32.totalorder %s534_s24, %s534_s24 }
  0x7b   : > { %p3184_p0 = scmp.lt.s32.totalorder %s3182_s19, %s3175_s0 }
  0x7c   : > { %p3178_p11 = pnand %p3176_p10, %p3856_p8 }
  0x7d   : > { %p3185_p2 = por %p3184_p0, %p3183_p13 }
  0x7e   : > { %p3179_p12 = pneg %p3178_p11 }
  0x80   : > { %p3186_p5 = pnand %p3185_p2, %p3179_p12 }
  0x82   : > { %3189 = shalt.err (!%p3186_p5)
}
  0x83   : > { %2894 = dma.hbm_to_vmem [thread:$0]  (!%p3840_p6), %s4537_s7, 16, %s534_s24, [#allocation15]  }
  0x84   : > { %s3190_s17 = scalar_lea.hbm %s4539_s9, 256 }
  0x85   : > { %p3191_p7 = scmp.ne.s32.totalorder %s4539_s9, %s3190_s17  ;;  %p3197_p1 = scmp.lt.u32.totalorder %s3190_s17, %s4539_s9 }
  0x87   : > { %p3193_p9 = pnand %p3191_p7, %p3856_p8 }
  0x89   : > { %p3194_p4 = pneg %p3193_p9 }
  0x8b   : > { %p3199_p3 = pnand %p3197_p1, %p3194_p4 }
  0x8d   : > { %3202 = shalt.err (!%p3199_p3)
}
  0x8e   : > { %s3203_s0 = scalar_lea.vmem %s555_s23, 256  ;;  %p3211_p13 = scmp.lt.s32.totalorder %s555_s23, %s555_s23 }
  0x8f   : > { %p3204_p10 = scmp.ne.s32.totalorder %s555_s23, %s3203_s0  ;;  %p3212_p0 = scmp.lt.s32.totalorder %s3203_s0, %s3203_s0 }
  0x91   : > { %p3206_p11 = pnand %p3204_p10, %p3856_p8  ;;  %p3213_p2 = por %p3212_p0, %p3211_p13 }
  0x93   : > { %p3207_p12 = pneg %p3206_p11 }
  0x95   : > { %p3214_p5 = pnand %p3213_p2, %p3207_p12 }
  0x97   : > { %3217 = shalt.err (!%p3214_p5)
}
  0x98   : > { %2900 = dma.hbm_to_vmem [thread:$0]  (!%p3840_p6), %s4539_s9, 256, %s555_s23, [#allocation18], %s3675_s26, %s3675_s26, %s3676_s28  }
  0x99   : > { %s3679_s3 = smov [#allocation20]   ;;  %s3680_s29 = smov [#allocation23]  }
  0x9a   : > { %s579_s18 = sshll.u32 %s3679_s3, 4  ;;  %s600_s30 = sshll.u32 %s3680_s29, 4  ;;  %s580_s18 = int_to_ptr.vmem [resolvable:$true] %s579_s18  ;;  %s601_s30 = int_to_ptr.vmem [resolvable:$true] %s600_s30 }
  0x9b   : > { %s3218_s1 = scalar_lea.hbm %s4541_s11, 16 }
  0x9c   : > { %p3219_p7 = scmp.ne.s32.totalorder %s4541_s11, %s3218_s1  ;;  %p3225_p1 = scmp.lt.u32.totalorder %s3218_s1, %s4541_s11 }
  0x9e   : > { %p3221_p9 = pnand %p3219_p7, %p3856_p8 }
  0xa0   : > { %p3222_p4 = pneg %p3221_p9 }
  0xa2   : > { %p3227_p3 = pnand %p3225_p1, %p3222_p4 }
  0xa4   : > { %3230 = shalt.err (!%p3227_p3)
}
  0xa5   : > { %s3231_s23 = scalar_lea.vmem %s580_s18, 16  ;;  %s3238_s19 = scalar_lea.vmem %s580_s18, 32 }
  0xa6   : > { %p3232_p10 = scmp.ne.s32.totalorder %s580_s18, %s3231_s23  ;;  %p3239_p13 = scmp.lt.s32.totalorder %s580_s18, %s580_s18 }
  0xa7   : > { %p3240_p0 = scmp.lt.s32.totalorder %s3238_s19, %s3231_s23 }
  0xa8   : > { %p3234_p11 = pnand %p3232_p10, %p3856_p8 }
  0xa9   : > { %p3241_p2 = por %p3240_p0, %p3239_p13 }
  0xaa   : > { %p3235_p12 = pneg %p3234_p11 }
  0xac   : > { %p3242_p5 = pnand %p3241_p2, %p3235_p12 }
  0xae   : > { %3245 = shalt.err (!%p3242_p5)
}
  0xaf   : > { %2906 = dma.hbm_to_vmem [thread:$0]  (!%p3840_p6), %s4541_s11, 16, %s580_s18, [#allocation21]  }
  0xb0   : > { %s3246_s1 = scalar_lea.hbm %s4543_s13, 256 }
  0xb1   : > { %p3247_p7 = scmp.ne.s32.totalorder %s4543_s13, %s3246_s1  ;;  %p3253_p1 = scmp.lt.u32.totalorder %s3246_s1, %s4543_s13 }
  0xb3   : > { %p3249_p9 = pnand %p3247_p7, %p3856_p8 }
  0xb5   : > { %p3250_p4 = pneg %p3249_p9 }
  0xb7   : > { %p3255_p3 = pnand %p3253_p1, %p3250_p4 }
  0xb9   : > { %3258 = shalt.err (!%p3255_p3)
}
  0xba   : > { %s3259_s23 = scalar_lea.vmem %s601_s30, 256  ;;  %p3267_p13 = scmp.lt.s32.totalorder %s601_s30, %s601_s30 }
  0xbb   : > { %p3260_p10 = scmp.ne.s32.totalorder %s601_s30, %s3259_s23  ;;  %p3268_p0 = scmp.lt.s32.totalorder %s3259_s23, %s3259_s23 }
  0xbd   : > { %p3262_p11 = pnand %p3260_p10, %p3856_p8  ;;  %p3269_p2 = por %p3268_p0, %p3267_p13 }
  0xbf   : > { %p3263_p12 = pneg %p3262_p11 }
  0xc1   : > { %p3270_p5 = pnand %p3269_p2, %p3263_p12 }
  0xc3   : > { %3273 = shalt.err (!%p3270_p5)
}
  0xc4   : > { %2912 = dma.hbm_to_vmem [thread:$0]  (!%p3840_p6), %s4543_s13, 256, %s601_s30, [#allocation24], %s3675_s26, %s3675_s26, %s3676_s28  }
  0xc5   : > { %s3681_s3 = smov [#allocation26]   ;;  %s3682_s17 = smov [#allocation7]  }
  0xc6   : > { %s624_s29 = sshll.u32 %s3681_s3, 4  ;;  %s472_s25 = sshll.u32 %s3682_s17, 4  ;;  %s625_s29 = int_to_ptr.vmem [resolvable:$true] %s624_s29  ;;  %s473_s25 = int_to_ptr.vmem [resolvable:$true] %s472_s25 }
  0xc7   : > { %s3274_s21 = scalar_lea.hbm %s4545_s15, 1024 }
  0xc8   : > { %p3275_p7 = scmp.ne.s32.totalorder %s4545_s15, %s3274_s21  ;;  %p3281_p1 = scmp.lt.u32.totalorder %s3274_s21, %s4545_s15 }
  0xca   : > { %p3277_p9 = pnand %p3275_p7, %p3856_p8 }
  0xcc   : > { %p3278_p4 = pneg %p3277_p9 }
  0xce   : > { %p3283_p3 = pnand %p3281_p1, %p3278_p4 }
  0xd0   : > { %3286 = shalt.err (!%p3283_p3)
}
  0xd1   : > { %s3287_s30 = scalar_lea.vmem %s625_s29, 1024  ;;  %p3295_p13 = scmp.lt.s32.totalorder %s625_s29, %s625_s29 }
  0xd2   : > { %p3288_p10 = scmp.ne.s32.totalorder %s625_s29, %s3287_s30  ;;  %p3296_p0 = scmp.lt.s32.totalorder %s3287_s30, %s3287_s30 }
  0xd4   : > { %p3290_p11 = pnand %p3288_p10, %p3856_p8  ;;  %p3297_p2 = por %p3296_p0, %p3295_p13 }
  0xd6   : > { %p3291_p12 = pneg %p3290_p11 }
  0xd8   : > { %p3298_p5 = pnand %p3297_p2, %p3291_p12 }
  0xda   : > { %3301 = shalt.err (!%p3298_p5)
}
  0xdb   : > { %2918 = dma.hbm_to_vmem [thread:$0]  (!%p3840_p6), %s4545_s15, 1024, %s625_s29, [#allocation27], %s3675_s26, %s3675_s26, %s3676_s28  }
  0xdc   : > { %s4586_s2 = sld [smem:[#allocation50_spill]] }
  0xe2   : > { %s3302_s27 = scalar_lea.hbm %s4586_s2, 16 }
  0xe3   : > { %p3303_p7 = scmp.ne.s32.totalorder %s4586_s2, %s3302_s27  ;;  %p3309_p1 = scmp.lt.u32.totalorder %s3302_s27, %s4586_s2 }
  0xe5   : > { %p3305_p9 = pnand %p3303_p7, %p3856_p8 }
  0xe7   : > { %p3306_p4 = pneg %p3305_p9 }
  0xe9   : > { %p3311_p3 = pnand %p3309_p1, %p3306_p4 }
  0xeb   : > { %3314 = shalt.err (!%p3311_p3)
}
  0xec   : > { %s3315_s18 = scalar_lea.vmem %s473_s25, 16  ;;  %s3322_s29 = scalar_lea.vmem %s473_s25, 32 }
  0xed   : > { %p3316_p10 = scmp.ne.s32.totalorder %s473_s25, %s3315_s18  ;;  %p3323_p13 = scmp.lt.s32.totalorder %s473_s25, %s473_s25 }
  0xee   : > { %p3324_p0 = scmp.lt.s32.totalorder %s3322_s29, %s3315_s18 }
  0xef   : > { %p3318_p11 = pnand %p3316_p10, %p3856_p8 }
  0xf0   : > { %p3325_p2 = por %p3324_p0, %p3323_p13 }
  0xf1   : > { %p3319_p12 = pneg %p3318_p11 }
  0xf3   : > { %p3326_p5 = pnand %p3325_p2, %p3319_p12 }
  0xf5   : > { %3329 = shalt.err (!%p3326_p5)
}
  0xf6   : > { %2879 = dma.hbm_to_vmem [thread:$0]  (!%p3840_p6), %s4586_s2, 16, %s473_s25, [#allocation6]  }
  0xf7   : > { %s3683_s3 = smov [#allocation10]   ;;  %s3684_s1 = smov [#allocation13]  }
  0xf8   : > { %s495_s17 = sshll.u32 %s3683_s3, 4  ;;  %s522_s27 = sshll.u32 %s3684_s1, 4  ;;  %s496_s17 = int_to_ptr.vmem [resolvable:$true] %s495_s17  ;;  %s523_s27 = int_to_ptr.vmem [resolvable:$true] %s522_s27 }
  0xf9   : > { %s4587_s4 = sld [smem:[#allocation52_spill]] }
  0xff   : > { %s3330_s24 = scalar_lea.hbm %s4587_s4, 256 }
 0x100   : > { %p3331_p7 = scmp.ne.s32.totalorder %s4587_s4, %s3330_s24  ;;  %p3337_p1 = scmp.lt.u32.totalorder %s3330_s24, %s4587_s4 }
 0x102   : > { %p3333_p9 = pnand %p3331_p7, %p3856_p8 }
 0x104   : > { %p3334_p4 = pneg %p3333_p9 }
 0x106   : > { %p3339_p3 = pnand %p3337_p1, %p3334_p4 }
 0x108   : > { %3342 = shalt.err (!%p3339_p3)
}
 0x109   : > { %s3343_s25 = scalar_lea.vmem %s496_s17, 256  ;;  %p3351_p13 = scmp.lt.s32.totalorder %s496_s17, %s496_s17 }
 0x10a   : > { %p3344_p10 = scmp.ne.s32.totalorder %s496_s17, %s3343_s25  ;;  %p3352_p0 = scmp.lt.s32.totalorder %s3343_s25, %s3343_s25 }
 0x10c   : > { %p3346_p11 = pnand %p3344_p10, %p3856_p8  ;;  %p3353_p2 = por %p3352_p0, %p3351_p13 }
 0x10e   : > { %p3347_p12 = pneg %p3346_p11 }
 0x110   : > { %p3354_p5 = pnand %p3353_p2, %p3347_p12 }
 0x112   : > { %3357 = shalt.err (!%p3354_p5)
}
 0x113   : > { %2885 = dma.hbm_to_vmem [thread:$0]  (!%p3840_p6), %s4587_s4, 256, %s496_s17, [#allocation9], %s3675_s26, %s3675_s26, %s3676_s28  }
 0x114   : > { %s3358_s0 = scalar_lea.hbm %s4536_s6, 16 }
 0x115   : > { %p3359_p7 = scmp.ne.s32.totalorder %s4536_s6, %s3358_s0  ;;  %p3365_p1 = scmp.lt.u32.totalorder %s3358_s0, %s4536_s6 }
 0x117   : > { %p3361_p9 = pnand %p3359_p7, %p3856_p8 }
 0x119   : > { %p3362_p4 = pneg %p3361_p9 }
 0x11b   : > { %p3367_p3 = pnand %p3365_p1, %p3362_p4 }
 0x11d   : > { %3370 = shalt.err (!%p3367_p3)
}
 0x11e   : > { %s3371_s30 = scalar_lea.vmem %s523_s27, 16  ;;  %s3378_s26 = scalar_lea.vmem %s523_s27, 32 }
 0x11f   : > { %p3372_p10 = scmp.ne.s32.totalorder %s523_s27, %s3371_s30  ;;  %p3379_p13 = scmp.lt.s32.totalorder %s523_s27, %s523_s27 }
 0x120   : > { %p3380_p0 = scmp.lt.s32.totalorder %s3378_s26, %s3371_s30 }
 0x121   : > { %p3374_p11 = pnand %p3372_p10, %p3856_p8 }
 0x122   : > { %p3381_p2 = por %p3380_p0, %p3379_p13 }
 0x123   : > { %p3375_p12 = pneg %p3374_p11 }
 0x125   : > { %p3382_p5 = pnand %p3381_p2, %p3375_p12 }
 0x127   : > { %3385 = shalt.err (!%p3382_p5)
}
 0x128   : > { %2891 = dma.hbm_to_vmem [thread:$0]  (!%p3840_p6), %s4536_s6, 16, %s523_s27, [#allocation12]  }
 0x129   : > { %s3685_s25 = smov [#allocation16]   ;;  %s3686_s3 = smov [#allocation19]  }
 0x12a   : > { %s544_s19 = sshll.u32 %s3685_s25, 4  ;;  %s568_s1 = sshll.u32 %s3686_s3, 4  ;;  %s545_s19 = int_to_ptr.vmem [resolvable:$true] %s544_s19  ;;  %s569_s1 = int_to_ptr.vmem [resolvable:$true] %s568_s1 }
 0x12b   : > { %s3386_s24 = scalar_lea.hbm %s4538_s8, 16 }
 0x12c   : > { %p3387_p7 = scmp.ne.s32.totalorder %s4538_s8, %s3386_s24  ;;  %p3393_p1 = scmp.lt.u32.totalorder %s3386_s24, %s4538_s8 }
 0x12e   : > { %p3389_p9 = pnand %p3387_p7, %p3856_p8 }
 0x130   : > { %p3390_p4 = pneg %p3389_p9 }
 0x132   : > { %p3395_p3 = pnand %p3393_p1, %p3390_p4 }
 0x134   : > { %3398 = shalt.err (!%p3395_p3)
}
 0x135   : > { %s3399_s27 = scalar_lea.vmem %s545_s19, 16  ;;  %s3406_s26 = scalar_lea.vmem %s545_s19, 32 }
 0x136   : > { %p3400_p10 = scmp.ne.s32.totalorder %s545_s19, %s3399_s27  ;;  %p3407_p13 = scmp.lt.s32.totalorder %s545_s19, %s545_s19 }
 0x137   : > { %p3408_p0 = scmp.lt.s32.totalorder %s3406_s26, %s3399_s27 }
 0x138   : > { %p3402_p11 = pnand %p3400_p10, %p3856_p8 }
 0x139   : > { %p3409_p2 = por %p3408_p0, %p3407_p13 }
 0x13a   : > { %p3403_p12 = pneg %p3402_p11 }
 0x13c   : > { %p3410_p5 = pnand %p3409_p2, %p3403_p12 }
 0x13e   : > { %3413 = shalt.err (!%p3410_p5)
}
 0x13f   : > { %2897 = dma.hbm_to_vmem [thread:$0]  (!%p3840_p6), %s4538_s8, 16, %s545_s19, [#allocation15]  }
 0x140   : > { %s3414_s21 = scalar_lea.hbm %s4540_s10, 16 }
 0x141   : > { %p3415_p7 = scmp.ne.s32.totalorder %s4540_s10, %s3414_s21  ;;  %p3421_p1 = scmp.lt.u32.totalorder %s3414_s21, %s4540_s10 }
 0x143   : > { %p3417_p9 = pnand %p3415_p7, %p3856_p8 }
 0x145   : > { %p3418_p4 = pneg %p3417_p9 }
 0x147   : > { %p3423_p3 = pnand %p3421_p1, %p3418_p4 }
 0x149   : > { %3426 = shalt.err (!%p3423_p3)
}
 0x14a   : > { %s3427_s29 = scalar_lea.vmem %s569_s1, 16  ;;  %s3434_s19 = scalar_lea.vmem %s569_s1, 32 }
 0x14b   : > { %p3428_p10 = scmp.ne.s32.totalorder %s569_s1, %s3427_s29  ;;  %p3435_p13 = scmp.lt.s32.totalorder %s569_s1, %s569_s1 }
 0x14c   : > { %p3436_p0 = scmp.lt.s32.totalorder %s3434_s19, %s3427_s29 }
 0x14d   : > { %p3430_p11 = pnand %p3428_p10, %p3856_p8 }
 0x14e   : > { %p3437_p2 = por %p3436_p0, %p3435_p13 }
 0x14f   : > { %p3431_p12 = pneg %p3430_p11 }
 0x151   : > { %p3438_p5 = pnand %p3437_p2, %p3431_p12 }
 0x153   : > { %3441 = shalt.err (!%p3438_p5)
}
 0x154   : > { %2903 = dma.hbm_to_vmem [thread:$0]  (!%p3840_p6), %s4540_s10, 16, %s569_s1, [#allocation18]  }
 0x155   : > { %s3687_s26 = smov [#allocation22]   ;;  %s3688_s17 = smov [#allocation25]  }
 0x156   : > { %s590_s28 = sshll.u32 %s3687_s26, 4  ;;  %s614_s25 = sshll.u32 %s3688_s17, 4  ;;  %s591_s28 = int_to_ptr.vmem [resolvable:$true] %s590_s28  ;;  %s615_s25 = int_to_ptr.vmem [resolvable:$true] %s614_s25 }
 0x157   : > { %s3442_s0 = scalar_lea.hbm %s4542_s12, 16 }
 0x158   : > { %p3443_p7 = scmp.ne.s32.totalorder %s4542_s12, %s3442_s0  ;;  %p3449_p1 = scmp.lt.u32.totalorder %s3442_s0, %s4542_s12 }
 0x15a   : > { %p3445_p9 = pnand %p3443_p7, %p3856_p8 }
 0x15c   : > { %p3446_p4 = pneg %p3445_p9 }
 0x15e   : > { %p3451_p3 = pnand %p3449_p1, %p3446_p4 }
 0x160   : > { %3454 = shalt.err (!%p3451_p3)
}
 0x161   : > { %s3455_s1 = scalar_lea.vmem %s591_s28, 16  ;;  %s3462_s19 = scalar_lea.vmem %s591_s28, 32 }
 0x162   : > { %p3456_p10 = scmp.ne.s32.totalorder %s591_s28, %s3455_s1  ;;  %p3463_p13 = scmp.lt.s32.totalorder %s591_s28, %s591_s28 }
 0x163   : > { %p3464_p0 = scmp.lt.s32.totalorder %s3462_s19, %s3455_s1 }
 0x164   : > { %p3458_p11 = pnand %p3456_p10, %p3856_p8 }
 0x165   : > { %p3465_p2 = por %p3464_p0, %p3463_p13 }
 0x166   : > { %p3459_p12 = pneg %p3458_p11 }
 0x168   : > { %p3466_p5 = pnand %p3465_p2, %p3459_p12 }
 0x16a   : > { %3469 = shalt.err (!%p3466_p5)
}
 0x16b   : > { %2909 = dma.hbm_to_vmem [thread:$0]  (!%p3840_p6), %s4542_s12, 16, %s591_s28, [#allocation21]  }
 0x16c   : > { %s3470_s3 = scalar_lea.hbm %s4544_s14, 16 }
 0x16d   : > { %p3471_p7 = scmp.ne.s32.totalorder %s4544_s14, %s3470_s3  ;;  %p3477_p1 = scmp.lt.u32.totalorder %s3470_s3, %s4544_s14 }
 0x16f   : > { %p3473_p9 = pnand %p3471_p7, %p3856_p8 }
 0x171   : > { %p3474_p4 = pneg %p3473_p9 }
 0x173   : > { %p3479_p3 = pnand %p3477_p1, %p3474_p4 }
 0x175   : > { %3482 = shalt.err (!%p3479_p3)
}
 0x176   : > { %s3483_s18 = scalar_lea.vmem %s615_s25, 16  ;;  %s3490_s28 = scalar_lea.vmem %s615_s25, 32 }
 0x177   : > { %p3484_p10 = scmp.ne.s32.totalorder %s615_s25, %s3483_s18  ;;  %p3491_p13 = scmp.lt.s32.totalorder %s615_s25, %s615_s25 }
 0x178   : > { %p3492_p0 = scmp.lt.s32.totalorder %s3490_s28, %s3483_s18 }
 0x179   : > { %p3486_p11 = pnand %p3484_p10, %p3856_p8 }
 0x17a   : > { %p3493_p2 = por %p3492_p0, %p3491_p13 }
 0x17b   : > { %p3487_p12 = pneg %p3486_p11 }
 0x17d   : > { %p3494_p5 = pnand %p3493_p2, %p3487_p12 }
 0x17f   : > { %3497 = shalt.err (!%p3494_p5)
}
 0x180   : > { %2915 = dma.hbm_to_vmem [thread:$0]  (!%p3840_p6), %s4544_s14, 16, %s615_s25, [#allocation24]  }
 0x181   : > { %s3689_s19 = smov [#allocation28]   ;;  %s3498_s17 = scalar_lea.hbm %s4546_s16, 16 }
 0x182   : > { %s638_s30 = sshll.u32 %s3689_s19, 4  ;;  %p3499_p7 = scmp.ne.s32.totalorder %s4546_s16, %s3498_s17  ;;  %s639_s30 = int_to_ptr.vmem [resolvable:$true] %s638_s30 }
 0x183   : > { %p3505_p1 = scmp.lt.u32.totalorder %s3498_s17, %s4546_s16 }
 0x184   : > { %p3501_p9 = pnand %p3499_p7, %p3856_p8 }
 0x186   : > { %p3502_p4 = pneg %p3501_p9 }
 0x188   : > { %p3507_p3 = pnand %p3505_p1, %p3502_p4 }
 0x18a   : > { %3510 = shalt.err (!%p3507_p3)
}
 0x18b   : > { %s3511_s25 = scalar_lea.vmem %s639_s30, 16  ;;  %s3518_s23 = scalar_lea.vmem %s639_s30, 32 }
 0x18c   : > { %p3512_p10 = scmp.ne.s32.totalorder %s639_s30, %s3511_s25  ;;  %p3519_p13 = scmp.lt.s32.totalorder %s639_s30, %s639_s30 }
 0x18d   : > { %p3520_p0 = scmp.lt.s32.totalorder %s3518_s23, %s3511_s25 }
 0x18e   : > { %p3514_p11 = pnand %p3512_p10, %p3856_p8 }
 0x18f   : > { %p3521_p2 = por %p3520_p0, %p3519_p13 }
 0x190   : > { %p3515_p12 = pneg %p3514_p11 }
 0x192   : > { %p3522_p5 = pnand %p3521_p2, %p3515_p12 }
 0x194   : > { %3525 = shalt.err (!%p3522_p5)
}
 0x195   : > { %s4588_s29 = sld [smem:[#allocation45_spill]]  ;;  %s4589_s1 = sld [smem:[#allocation44_spill]] }
 0x196   : > { %s4590_s19 = sld [smem:[#allocation42_spill]]  ;;  %s4591_s27 = sld [smem:[#allocation41_spill]] }
 0x197   : > { %s4592_s20 = sld [smem:[#allocation40_spill]]  ;;  %s4593_s26 = sld [smem:[#allocation46_spill]] }
 0x198   : > { %2921 = dma.hbm_to_vmem [thread:$0]  (!%p3840_p6), %s4546_s16, 16, %s639_s30, [#allocation27]  }
 0x19b   : > { %s2564_s17 = sadd.s32 4294967294, %s4588_s29   ;;  %s53_s3 = sadd.s32 1, %s4589_s1 }
 0x19c   : > { %p55_p8 = scmp.ge.s32.totalorder %s53_s3, 2  ;;  %s60_s22 = sadd.s32 1, %s4590_s19 }
 0x19d   : > { %p67_p7 = scmp.ne.s32.totalorder %s4590_s19, %s4591_s27  ;;  %p68_p9 = scmp.eq.s32.totalorder %s4588_s29, 0 }
 0x19e   : > { %s4620_s3 = smov (%p55_p8, %s53_s3), 0  ;;  %p73_p1 = scmp.ne.s32.totalorder %s4591_s27, %s4592_s20 }
 0x19f   : > { %p4174_p4 = por %p68_p9, %p67_p7  ;;  %s57_s30 = ssub.s32 %s4589_s1, %s4620_s3 }
 0x1a0   : > { %s4595_s0 = sadd.s32 4294967295, %s4588_s29   ;;  %p58_p3 = scmp.eq.s32.totalorder %s57_s30, 0 }
 0x1a1   : > { %p435_p6 = scmp.eq.s32.totalorder %s4595_s0, 1  ;;  %p4596_p10 = scmp.ne.s32.totalorder %s4593_s26, 0 }
 0x1a2   : > { %p441_p13 = scmp.eq.s32.totalorder %s2564_s17, 1  ;;  %p2946_p2 = scmp.lt.s32.totalorder %s4588_s29, 2 }
 0x1a3   : > { %p4186_p11 = por %p4596_p10, %p73_p1  ;;  %p4190_p12 = por %p435_p6, %p67_p7 }
 0x1a4   : > { %s4195_s23 = scalar_select %p58_p3, %s4590_s19, %s60_s22  }
 0x1a5   : > { %s4598_s25 = scalar_select %p4190_p12, 1, 0 }
 0x1a6   : > { %p4197_p0 = por %p441_p13, %p73_p1  ;;  %s649_s28 = sand.u32 1, %s4590_s19  }
 0x1a7   : > { %s2584_s27 = sshll.u32 %s4589_s1, 7  ;;  %s2583_s20 = sshll.u32 %s649_s28, 3 }
 0x1a8   : > { %s4599_s18 = scalar_select %p4197_p0, 1, 0 }
 0x1a9   : > { %s4600_s0 = sld [smem:[#allocation48_spill]]  ;;  %s653_s17 = scalar_lea.vmem [#allocation2], %s2583_s20 }
 0x1aa   : > { %s660_s22 = sshll.u32 %s653_s17, 4  ;;  %p4211_p5 = pnand %p2946_p2, %p4174_p4  ;;  %s4215_s22 = int_to_ptr.vmem [resolvable:$true] %s660_s22 }
 0x1ab   : > { %s650_s29 = scalar_lea.sflag [#allocation3], %s649_s28 }
 0x1ac   : > { %p3528_p7 = pneg %p4211_p5 }
 0x1af   : > { %s4207_s2 = scalar_lea.hbm %s4600_s0, %s2584_s27  ;;  %s3531_s21 = scalar_lea.hbm %s4600_s0, 256 }
 0x1b0   : > { %s3526_s1 = scalar_lea.hbm %s4207_s2, 128  ;;  %p3532_p4 = scmp.lt.u32.totalorder %s4207_s2, %s4600_s0 }
 0x1b1   : > { %p3527_p8 = scmp.ne.s32.totalorder %s4207_s2, %s3526_s1  ;;  %p3533_p6 = scmp.lt.u32.totalorder %s3531_s21, %s3526_s1 }
 0x1b2   : > { %p3535_p10 = scmp.lt.u32.totalorder %s3526_s1, %s4207_s2 }
 0x1b3   : > { %p3529_p9 = pnand %p3528_p7, %p3527_p8  ;;  %p3534_p3 = por %p3533_p6, %p3532_p4 }
 0x1b5   : > { %p3530_p1 = pneg %p3529_p9  ;;  %p3536_p13 = por %p3535_p10, %p3534_p3 }
 0x1b7   : > { %p3537_p2 = pnand %p3536_p13, %p3530_p1 }
 0x1b9   : > { %3540 = shalt.err (!%p3537_p2)
}
 0x1ba   : > { %s3541_s28 = scalar_lea.vmem %s4215_s22, 128  ;;  %s3690_s30 = smov [#allocation2]  }
 0x1bb   : > { %p3542_p8 = scmp.ne.s32.totalorder %s4215_s22, %s3541_s28  ;;  %s3546_s17 = sshll.u32 %s3690_s30, 4  ;;  %s3547_s17 = int_to_ptr.vmem [resolvable:$false] %s3546_s17 }
 0x1bc   : > { %s3548_s19 = scalar_lea.vmem %s3547_s17, 256  ;;  %p3549_p12 = scmp.lt.s32.totalorder %s4215_s22, %s3547_s17 }
 0x1bd   : > { %p3544_p9 = pnand %p3542_p8, %p3528_p7  ;;  %p3550_p4 = scmp.lt.s32.totalorder %s3548_s19, %s3541_s28 }
 0x1bf   : > { %p3545_p0 = pneg %p3544_p9  ;;  %p3551_p6 = por %p3550_p4, %p3549_p12 }
 0x1c1   : > { %p3552_p3 = pnand %p3551_p6, %p3545_p0 }
 0x1c3   : > { %3555 = shalt.err (!%p3552_p3)
}
 0x1c4   : > { %2925 = dma.hbm_to_vmem [thread:$0]  (!%p4211_p5), %s4207_s2, 128, %s4215_s22, %s650_s29  }
 0x1c5   : > { %s4602_s1 = sld [smem:[#allocation47_spill]] }
 0x1cb   : > { %p4603_p1 = scmp.ne.s32.totalorder %s4602_s1, 0 }
 0x1cc   : > { %s4604_s27 = sld [smem:[#allocation41_spill]] (!%p4603_p1) }
 0x1cd   : > { %669 = sbr.rel (%p4603_p1) target bundleno = 2941 (0xb7d), region = 88 }
 0x1d2   : > { %s4245_s21 = sand.u32 (!%p4603_p1), 1, %s4604_s27  }
 0x1d3   : > { %s2586_s20 = sshll.u32 (!%p4603_p1), %s4245_s21, 3  ;;  %s672_s26 = scalar_lea.sflag (!%p4603_p1), [#allocation3], %s4245_s21 }
 0x1d4   : > { %s675_s28 = scalar_lea.vmem [#allocation2], %s2586_s20 }
 0x1d5   : > { %3609 = dma.done.wait (%p4186_p11), %s672_s26, 128  }
 0x1d6   : > { %3611 = vsyncadd (%p4186_p11), %s672_s26, 4294967168  ;;  %s4605_s2 = sld [smem:[#allocation46_spill]] }
 0x1dc   : > { %p4606_p12 = scmp.ne.s32.totalorder %s4605_s2, 0 }
 0x1de   : > { %3613 = dma.done.wait (%p4606_p12), [#allocation6], 32  }
 0x1df   : > { %3615 = vsyncadd (%p4606_p12), [#allocation6], 4294967264 }
 0x1e0   : > { %3617 = dma.done.wait (%p4606_p12), [#allocation9], 512  }
 0x1e1   : > { %3619 = vsyncadd (%p4606_p12), [#allocation9], 4294966784 }
 0x1e2   : > { %3621 = dma.done.wait (%p4606_p12), [#allocation12], 272  }
 0x1e3   : > { %3623 = vsyncadd (%p4606_p12), [#allocation12], 4294967024 }
 0x1e4   : > { %3625 = dma.done.wait (%p4606_p12), [#allocation15], 32  }
 0x1e5   : > { %3627 = vsyncadd (%p4606_p12), [#allocation15], 4294967264 }
 0x1e6   : > { %3629 = dma.done.wait (%p4606_p12), [#allocation18], 272  }
 0x1e7   : > { %3631 = vsyncadd (%p4606_p12), [#allocation18], 4294967024 }
 0x1e8   : > { %3633 = dma.done.wait (%p4606_p12), [#allocation21], 32  }
 0x1e9   : > { %3635 = vsyncadd (%p4606_p12), [#allocation21], 4294967264 }
 0x1ea   : > { %3637 = dma.done.wait (%p4606_p12), [#allocation24], 272  }
 0x1eb   : > { %3639 = vsyncadd (%p4606_p12), [#allocation24], 4294967024 }
 0x1ec   : > { %3641 = dma.done.wait (%p4606_p12), [#allocation27], 1040  }
 0x1ed   : > { %3643 = vsyncadd (%p4606_p12), [#allocation27], 4294966256  ;;  %vm794_vm0 = vcmask 261120   ;;  %v4287_v0 = vld [vmem:[%s675_s28] sm:$0xff]  ;;  %v3040_v7 = vld [vmem:[#allocation8] sm:$0xff]   ;;  %v3691_v8 = vmov 0.0   ;;  %v1032_v45 = vlaneseq }
 0x1ee   : > { %v795_v1 = vsel %vm794_vm0, %v4287_v0, 0.0  ;;  %2697 = vmatprep.subr.bf16.mxu0 %v3691_v8  ;;  %vm3692_vm1 = vmmov 0   ;;  %v3041_v9 = vld [vmem:[#allocation8 + $0x8] sm:$0xff]   ;;  %2721 = vmatprep.subr.bf16.mxu1 %v3691_v8  ;;  %v2604_v14 = vld [vmem:[#allocation5] ss:$0 sm:$0xff]  ;;  %v3042_v19 = vld [vmem:[#allocation10] sm:$0xff]  }
 0x1ef   : > { %796 = vadd.xlane.f32.xlu0 %v795_v1  ;;  %2701 = vmatprep.mubr.msk.bf16.mxu0 %vm3692_vm1, %v3691_v8  ;;  %v2605_v16 = vld [vmem:[#allocation7] ss:$0 sm:$0xff]  ;;  %v3044_v22 = vld [vmem:[#allocation11] sm:$0xff]   ;;  %v3045_v23 = vld [vmem:[#allocation11 + $0x8] sm:$0xff]   ;;  %s3693_s4 = smov 104   ;;  %s3694_s24 = smov 120  }
 0x1f0   : > { %2698 = vmatpush3.bf16.msra.mxu0 %v3040_v7  ;;  %2723 = vmatprep.mubr.msk.bf16.mxu1 %vm3692_vm1, %v3691_v8  ;;  %v3043_v21 = vld [vmem:[#allocation10 + $0x8] sm:$0xff]   ;;  %v2610_v28 = vld [vmem:[#allocation14] ss:$0 sm:$0xff]  ;;  %v2606_v32 = vld [vmem:[#allocation13] ss:$0 sm:$0xff]  ;;  %s3695_s22 = smov 112  }
 0x1f1   : > { %2699 = vmatprep.subr.bf16.mxu0 %v3691_v8  ;;  %v2614_v41 = vld [vmem:[#allocation16] ss:$0 sm:$0xff]  ;;  %v3696_v43 = vmov 1983009808   ;;  %v3697_v46 = vmov 1934713408  }
 0x1f2   : > { %v1030_v44 = vunpack.c.l.s4 %v3696_v43  ;;  %v1062_v47 = vunpack.c.l.s4 %v3697_v46  ;;  %v1033_v49 = vshrl.u32 %v1032_v45, 7  ;;  %vm1467_vm2 = vcmask 64512   ;;  %s3698_s29 = smov 16   ;;  %s3699_s30 = smov 8  }
 0x1f3   : > { %vm1699_vm3 = vcmask 1043456   ;;  %s3700_s17 = smov 24   ;;  %vm2034_vm4 = vcmask 130048   ;;  %vm2036_vm5 = vcmask 195584   ;;  %s4607_s19 = sld [smem:[#allocation43_spill]] }
 0x1f4   : > { %2700 = vmatpush3.bf16.msra.mxu0 %v3041_v9  ;;  %v1031_v48 = vunpack.c.0.s8 %v1030_v44  ;;  %v1063_v52 = vunpack.c.0.s8 %v1062_v47  ;;  %s789_s27 = scalar_lea.vmem [#allocation29], %s2586_s20  ;;  %s2318_s20 = scalar_lea.sflag [#allocation4], %s4245_s21 }
 0x1f5   : > { %2705 = vmatprep.subr.bf16.mxu0 %v3691_v8  ;;  %s2332_s26 = sshll.u32 %s789_s27, 4  ;;  %p4609_p0 = scmp.ne.s32.totalorder %s4598_s25, 0  ;;  %s4482_s26 = int_to_ptr.vmem [resolvable:$true] %s2332_s26 }
 0x1f6   : > { %v4321_v53 = vsub.s32 %v1031_v48, %v1033_v49  ;;  %v4323_v59 = vsub.s32 %v1063_v52, %v1033_v49 }
 0x1f9   : > { %s2654_s1 = sshll.u32 %s4607_s19, 7 }
 0x27c   : > { %v797_v2 = vpop.xlane.xlu0 %796 }
 0x27d   : > { %v799_v3 = vmul.f32 0.03125, %v797_v2 }
 0x27f   : > { %v800_v4 = vsub.f32 %v4287_v0, %v799_v3 }
 0x281   : > { %v801_v5 = vmul.f32 %v800_v4, %v800_v4 }
 0x283   : > { %v802_v6 = vsel %vm794_vm0, %v801_v5, 0.0 }
 0x284   : > { %803 = vadd.xlane.f32.xlu0 %v802_v6 }
 0x311   : > { %v804_v10 = vpop.xlane.xlu0 %803 }
 0x312   : > { %v805_v11 = vmul.f32 0.03125, %v804_v10 }
 0x314   : > { %v806_v12 = vadd.f32 1e-05, %v805_v11 }
 0x316   : > { %3058 = vrsqrt.f32 %v806_v12 }
 0x320   : > { %v3059_v13 = vpop.eup %3058 }
 0x321   : > { %v808_v15 = vmul.f32 %v3059_v13, %v800_v4 }
 0x323   : > { %v815_v17 = vmul.f32 %v2604_v14, %v808_v15 }
 0x325   : > { %v822_v18 = vadd.f32 %v2605_v16, %v815_v17 }
 0x327   : > { %v823_v20 = vpack.c.bf16 %v822_v18, %v822_v18 }
 0x329   : > { %2702 = vmatmul.mubr.msk.bf16.vlgmr.msra.gmra.mrb[0].mxu0 %vm794_vm0, %v823_v20 }
 0x32a   : > { %2706 = vmatpush3.bf16.msra.mxu0 %v3042_v19  ;;  %2709 = vmatprep.mubr.msk.bf16.mxu0 %vm3692_vm1, %v3691_v8 }
 0x32b   : > { %2707 = vmatprep.subr.bf16.mxu0 %v3691_v8 }
 0x32e   : > { %2708 = vmatpush3.bf16.msra.mxu0 %v3043_v21 }
 0x32f   : > { %2713 = vmatprep.subr.bf16.mxu0 %v3691_v8 }
 0x331   : > { %2710 = vmatmul.mubr.msk.bf16.vlgmr.msra.gmra.mrb[4].mxu0 %vm794_vm0, %v823_v20 }
 0x332   : > { %2714 = vmatpush3.bf16.msra.mxu0 %v3044_v22  ;;  %2717 = vmatprep.mubr.msk.bf16.mxu0 %vm3692_vm1, %v3691_v8 }
 0x333   : > { %2715 = vmatprep.subr.bf16.mxu0 %v3691_v8 }
 0x336   : > { %2716 = vmatpush3.bf16.msra.mxu0 %v3045_v23 }
 0x337   : > { %2727 = vmatprep.subr.bf16.mxu0 %v3691_v8 }
 0x339   : > { %2718 = vmatmul.mubr.msk.bf16.vlgmr.msra.gmra.mrb[8].mxu0 %vm794_vm0, %v823_v20 }
 0x33a   : > { %2729 = vmatprep.mubr.msk.bf16.mxu0 %vm3692_vm1, %v3691_v8 }
 0x3fc   : > { %v884_v24 = vpop.f32.mrb[0].mxu0 }
 0x3fd   : > { %v2703_v25 = vpop.f32.mrb[1].mxu0  ;;  %v885_v35 = vadd.f32 %v2606_v32, %v884_v24 }
 0x3fe   : > { %v887_v26 = vpop.f32.mrb[2].mxu0 }
 0x3ff   : > { %v2704_v27 = vpop.f32.mrb[3].mxu0  ;;  %v1016_v37 = vmul.f32 0.35355338, %v885_v35 }
 0x404   : > { %v947_v29 = vpop.f32.mrb[4].mxu0 }
 0x405   : > { %v948_v30 = vadd.f32 %v2610_v28, %v947_v29  ;;  %v2711_v31 = vpop.f32.mrb[5].mxu0 }
 0x406   : > { %v950_v33 = vpop.f32.mrb[6].mxu0 }
 0x407   : > { %1174 = vrot.lane.b32.xlu0 %v948_v30, %s3693_s4  ;;  %1168 = vrot.lane.b32.xlu1 %v948_v30, %s3694_s24  ;;  %v2712_v34 = vpop.f32.mrb[7].mxu0 }
 0x40b   : > { %1171 = vrot.lane.b32.xlu1 %v948_v30, %s3695_s22 }
 0x40c   : > { %v1010_v36 = vpop.f32.mrb[8].mxu0 }
 0x40d   : > { %v2719_v38 = vpop.f32.mrb[9].mxu0  ;;  %v4318_v42 = vadd.f32 %v2614_v41, %v1010_v36 }
 0x40e   : > { %v1013_v39 = vpop.f32.mrb[10].mxu0 }
 0x40f   : > { %1018 = vrot.lane.b32.xlu1 %v1016_v37, %s3694_s24  ;;  %v2720_v40 = vpop.f32.mrb[11].mxu0 }
 0x413   : > { %1021 = vrot.lane.b32.xlu1 %v1016_v37, %s3695_s22 }
 0x417   : > { %1024 = vrot.lane.b32.xlu1 %v1016_v37, %s3693_s4 }
 0x41b   : > { %1318 = vrot.lane.b32.xlu1 %v4318_v42, %s3694_s24 }
 0x479   : > { %v1175_v50 = vpop.permute.xlu0 %1174  ;;  %v1169_v51 = vpop.permute.xlu1 %1168 }
 0x47a   : > { %v1193_v54 = vcombine.low %v1169_v51, %v1175_v50  ;;  %v1194_v55 = vcombine.high %v1169_v51, %v1175_v50 }
 0x47c   : > { %v1201_v60 = vrot.slane %v1193_v54, %v4321_v53  ;;  %v1208_v61 = vrot.slane %v1194_v55, %v4321_v53 }
 0x47d   : > { %v1172_v56 = vpop.permute.xlu1 %1171 }
 0x47e   : > { %v1177_v57 = vcombine.low %v948_v30, %v1172_v56  ;;  %v1178_v58 = vcombine.high %v948_v30, %v1172_v56 }
 0x480   : > { %v1185_v62 = vrot.slane %v1177_v57, %v4321_v53  ;;  %v1192_v63 = vrot.slane %v1178_v58, %v4321_v53 }
 0x481   : > { %v1019_v1 = vpop.permute.xlu1 %1018 }
 0x482   : > { %v1209_v2 = vcombine.low %v1185_v62, %v1201_v60  ;;  %v1210_v3 = vcombine.high %v1185_v62, %v1201_v60  ;;  %v1225_v4 = vcombine.low %v1192_v63, %v1208_v61  ;;  %v1226_v5 = vcombine.high %v1192_v63, %v1208_v61 }
 0x484   : > { %v1217_v6 = vrot.slane %v1209_v2, %v4323_v59  ;;  %v1224_v7 = vrot.slane %v1210_v3, %v4323_v59  ;;  %v1233_v9 = vrot.slane %v1225_v4, %v4323_v59  ;;  %v1240_v10 = vrot.slane %v1226_v5, %v4323_v59 }
 0x485   : > { %v1022_v11 = vpop.permute.xlu1 %1021 }
 0x486   : > { %v1245_v12 = vcombine.low %v1217_v6, %v1224_v7  ;;  %v2620_v13 = vcombine.high %v1217_v6, %v1224_v7  ;;  %v1261_v14 = vcombine.low %v1233_v9, %v1240_v10  ;;  %v2621_v15 = vcombine.high %v1233_v9, %v1240_v10 }
 0x487   : > { %v1027_v16 = vcombine.low %v1016_v37, %v1022_v11  ;;  %v1028_v17 = vcombine.high %v1016_v37, %v1022_v11 }
 0x488   : > { %v1252_v18 = vrot.slane %v1245_v12, %v4321_v53  ;;  %v1260_v19 = vrot.slane %v2620_v13, %v4321_v53  ;;  %v1268_v20 = vrot.slane %v1261_v14, %v4321_v53  ;;  %v1276_v21 = vrot.slane %v2621_v15, %v4321_v53 }
 0x489   : > { %v1025_v22 = vpop.permute.xlu1 %1024  ;;  %v1035_v27 = vrot.slane %v1027_v16, %v4321_v53  ;;  %v1042_v28 = vrot.slane %v1028_v17, %v4321_v53 }
 0x48a   : > { %v1043_v23 = vcombine.low %v1019_v1, %v1025_v22  ;;  %v1044_v24 = vcombine.high %v1019_v1, %v1025_v22  ;;  %v1277_v25 = vcombine.low %v1252_v18, %v1260_v19  ;;  %v1293_v26 = vcombine.low %v1268_v20, %v1276_v21 }
 0x48b   : > { %v1278_v33 = vcombine.high %v1252_v18, %v1260_v19  ;;  %v1294_v34 = vcombine.high %v1268_v20, %v1276_v21 }
 0x48c   : > { %v1051_v29 = vrot.slane %v1043_v23, %v4321_v53  ;;  %v1058_v30 = vrot.slane %v1044_v24, %v4321_v53  ;;  %v1285_v31 = vrot.slane %v1277_v25, %v4323_v59  ;;  %v1301_v32 = vrot.slane %v1293_v26, %v4323_v59 }
 0x48d   : > { %v1292_v48 = vrot.slane %v1278_v33, %v4323_v59  ;;  %v1308_v49 = vrot.slane %v1294_v34, %v4323_v59 }
 0x48e   : > { %v1059_v35 = vcombine.low %v1035_v27, %v1051_v29  ;;  %v1060_v36 = vcombine.high %v1035_v27, %v1051_v29  ;;  %v1075_v37 = vcombine.low %v1042_v28, %v1058_v30  ;;  %v1076_v38 = vcombine.high %v1042_v28, %v1058_v30 }
 0x48f   : > { %v1309_v39 = vcombine.low %v1285_v31, %v1301_v32  ;;  %v1310_v40 = vcombine.high %v1285_v31, %v1301_v32  ;;  %v1311_v1 = vcombine.low %v1292_v48, %v1308_v49  ;;  %v1312_v2 = vcombine.high %v1292_v48, %v1308_v49 }
 0x490   : > { %v1067_v41 = vrot.slane %v1059_v35, %v4323_v59  ;;  %v1074_v43 = vrot.slane %v1060_v36, %v4323_v59  ;;  %v1083_v44 = vrot.slane %v1075_v37, %v4323_v59  ;;  %v1090_v45 = vrot.slane %v1076_v38, %v4323_v59 }
 0x491   : > { %v1313_v46 = vpack.c.bf16 %v1309_v39, %v1309_v39  ;;  %v1314_v47 = vpack.c.bf16 %v1310_v40, %v1310_v40  ;;  %v1315_v10 = vpack.c.bf16 %v1311_v1, %v1311_v1  ;;  %v1316_v11 = vpack.c.bf16 %v1312_v2, %v1312_v2 }
 0x492   : > { %v1095_v50 = vcombine.low %v1067_v41, %v1074_v43  ;;  %v2618_v51 = vcombine.high %v1067_v41, %v1074_v43  ;;  %v1111_v52 = vcombine.low %v1083_v44, %v1090_v45  ;;  %v2619_v54 = vcombine.high %v1083_v44, %v1090_v45  ;;  %v1319_v43 = vpop.permute.xlu1 %1318 }
 0x493   : > { %v1472_v55 = vsel %vm1467_vm2, %v1313_v46, 0  ;;  %v1518_v56 = vsel %vm1467_vm2, %v1314_v47, 0  ;;  %v1564_v16 = vsel %vm1467_vm2, %v1315_v10, 0  ;;  %v1610_v17 = vsel %vm1467_vm2, %v1316_v11, 0 }
 0x494   : > { %v1102_v57 = vrot.slane %v1095_v50, %v4321_v53  ;;  %v1110_v58 = vrot.slane %v2618_v51, %v4321_v53  ;;  %v1118_v60 = vrot.slane %v1111_v52, %v4321_v53  ;;  %v1126_v61 = vrot.slane %v2619_v54, %v4321_v53  ;;  %2722 = vmatpush3.bf16.xpose.msra.mxu1 %v1472_v55 }
 0x495   : > { %2728 = vmatpush3.bf16.xpose.msra.mxu0 %v1518_v56  ;;  %2733 = vmatprep.subr.bf16.mxu1 %v3691_v8 }
 0x496   : > { %2739 = vmatprep.subr.bf16.mxu0 %v3691_v8  ;;  %v1127_v62 = vcombine.low %v1102_v57, %v1110_v58  ;;  %v1143_v63 = vcombine.low %v1118_v60, %v1126_v61  ;;  %v1128_v3 = vcombine.high %v1102_v57, %v1110_v58  ;;  %v1144_v4 = vcombine.high %v1118_v60, %v1126_v61 }
 0x498   : > { %v1135_v5 = vrot.slane %v1127_v62, %v4323_v59  ;;  %v1151_v6 = vrot.slane %v1143_v63, %v4323_v59  ;;  %v1142_v14 = vrot.slane %v1128_v3, %v4323_v59  ;;  %v1158_v15 = vrot.slane %v1144_v4, %v4323_v59 }
 0x49a   : > { %v1159_v7 = vcombine.low %v1135_v5, %v1151_v6  ;;  %v1160_v9 = vcombine.high %v1135_v5, %v1151_v6  ;;  %v1161_v18 = vcombine.low %v1142_v14, %v1158_v15  ;;  %v1162_v19 = vcombine.high %v1142_v14, %v1158_v15 }
 0x49c   : > { %v1163_v12 = vpack.c.bf16 %v1159_v7, %v1159_v7  ;;  %v1164_v13 = vpack.c.bf16 %v1160_v9, %v1160_v9  ;;  %v1165_v20 = vpack.c.bf16 %v1161_v18, %v1161_v18  ;;  %v1166_v21 = vpack.c.bf16 %v1162_v19, %v1162_v19 }
 0x49e   : > { %2724 = vmatmul.mubr.msk.bf16.vlgmr.msra.gmra.mrb[0].mxu1 %vm1467_vm2, %v1163_v12  ;;  %2730 = vmatmul.mubr.msk.bf16.vlgmr.msra.gmra.mrb[12].mxu0 %vm1467_vm2, %v1164_v13 }
 0x49f   : > { %2734 = vmatpush3.bf16.xpose.msra.mxu1 %v1564_v16  ;;  %2740 = vmatpush3.bf16.xpose.msra.mxu0 %v1610_v17 }
 0x4a0   : > { %2735 = vmatprep.mubr.msk.bf16.mxu1 %vm3692_vm1, %v3691_v8  ;;  %2741 = vmatprep.mubr.msk.bf16.mxu0 %vm3692_vm1, %v3691_v8 }
 0x4a1   : > { %2745 = vmatprep.subr.bf16.mxu1 %v3691_v8  ;;  %2751 = vmatprep.subr.bf16.mxu0 %v3691_v8 }
 0x4a6   : > { %2736 = vmatmul.mubr.msk.bf16.vlgmr.msra.gmra.mrb[4].mxu1 %vm1467_vm2, %v1165_v20  ;;  %2742 = vmatmul.mubr.msk.bf16.vlgmr.msra.gmra.mrb[16].mxu0 %vm1467_vm2, %v1166_v21 }
 0x4a7   : > { %2747 = vmatprep.mubr.msk.bf16.mxu1 %vm3692_vm1, %v3691_v8  ;;  %2753 = vmatprep.mubr.msk.bf16.mxu0 %vm3692_vm1, %v3691_v8 }
 0x571   : > { %v1508_v22 = vpop.f32.mrb[0].mxu1  ;;  %v1554_v23 = vpop.f32.mrb[12].mxu0 }
 0x572   : > { %v2725_v24 = vpop.f32.mrb[1].mxu1  ;;  %v2731_v25 = vpop.f32.mrb[13].mxu0  ;;  %v1652_v26 = vsel %vm1467_vm2, %v1508_v22, -inf  ;;  %v1655_v27 = vsel %vm1467_vm2, %v1554_v23, -inf }
 0x573   : > { %v1511_v28 = vpop.f32.mrb[2].mxu1  ;;  %1653 = vmax.xlane.f32.xlu1 %v1652_v26  ;;  %1656 = vmax.xlane.f32.xlu0 %v1655_v27  ;;  %v1557_v29 = vpop.f32.mrb[14].mxu0 }
 0x574   : > { %v2726_v30 = vpop.f32.mrb[3].mxu1  ;;  %v2732_v31 = vpop.f32.mrb[15].mxu0 }
 0x579   : > { %v4379_v32 = vpop.f32.mrb[4].mxu1  ;;  %v4381_v33 = vpop.f32.mrb[16].mxu0 }
 0x57a   : > { %v2737_v34 = vpop.f32.mrb[5].mxu1  ;;  %v2743_v35 = vpop.f32.mrb[17].mxu0  ;;  %v1658_v40 = vsel %vm1467_vm2, %v4379_v32, -inf  ;;  %v1661_v41 = vsel %vm1467_vm2, %v4381_v33, -inf }
 0x57b   : > { %v1603_v36 = vpop.f32.mrb[6].mxu1  ;;  %v1649_v37 = vpop.f32.mrb[18].mxu0 }
 0x57c   : > { %v2738_v38 = vpop.f32.mrb[7].mxu1  ;;  %v2744_v39 = vpop.f32.mrb[19].mxu0 }
 0x584   : > { %1324 = vrot.lane.b32.xlu1 %v4318_v42, %s3693_s4  ;;  %s4608_s4 = sld [smem:[#allocation53_spill]] }
 0x589   : > { %1321 = vrot.lane.b32.xlu0 %v4318_v42, %s3695_s22  ;;  %s3556_s22 = scalar_lea.vmem %s4482_s26, 128 }
 0x58a   : > { %s4480_s24 = scalar_lea.hbm %s4608_s4, %s2654_s1  ;;  %p3557_p11 = scmp.ne.s32.totalorder %s4482_s26, %s3556_s22 }
 0x58c   : > { %p3558_p5 = pnand %p3557_p11, %p4609_p0 }
 0x58e   : > { %p3559_p7 = pneg %p3558_p5 }
 0x5a8   : > { %1659 = vmax.xlane.f32.xlu1 %v1658_v40  ;;  %1662 = vmax.xlane.f32.xlu0 %v1661_v41 }
 0x600   : > { %v1654_v44 = vpop.xlane.xlu1 %1653  ;;  %v1657_v45 = vpop.xlane.xlu0 %1656 }
 0x601   : > { %v1664_v46 = vsub.f32 %v1508_v22, %v1654_v44  ;;  %v1665_v47 = vsub.f32 %v1554_v23, %v1657_v45 }
 0x603   : > { %v1668_v48 = vmul.f32 1.442695, %v1664_v46  ;;  %v1670_v49 = vmul.f32 1.442695, %v1665_v47 }
 0x604   : > { %v1325_v50 = vpop.permute.xlu1 %1324  ;;  %v1322_v51 = vpop.permute.xlu0 %1321 }
 0x605   : > { %3060 = vpow2.f32 %v1668_v48  ;;  %v1343_v52 = vcombine.low %v1319_v43, %v1325_v50  ;;  %v1344_v54 = vcombine.high %v1319_v43, %v1325_v50  ;;  %v1327_v55 = vcombine.low %v4318_v42, %v1322_v51 }
 0x606   : > { %3062 = vpow2.f32 %v1670_v49  ;;  %v1328_v56 = vcombine.high %v4318_v42, %v1322_v51 }
 0x607   : > { %v1351_v57 = vrot.slane %v1343_v52, %v4321_v53  ;;  %v1358_v58 = vrot.slane %v1344_v54, %v4321_v53  ;;  %v1335_v60 = vrot.slane %v1327_v55, %v4321_v53 }
 0x608   : > { %v1342_v61 = vrot.slane %v1328_v56, %v4321_v53 }
 0x609   : > { %v1359_v62 = vcombine.low %v1335_v60, %v1351_v57  ;;  %v1360_v63 = vcombine.high %v1335_v60, %v1351_v57 }
 0x60a   : > { %v1375_v1 = vcombine.low %v1342_v61, %v1358_v58  ;;  %v1376_v2 = vcombine.high %v1342_v61, %v1358_v58 }
 0x60b   : > { %v1367_v3 = vrot.slane %v1359_v62, %v4323_v59  ;;  %v1374_v4 = vrot.slane %v1360_v63, %v4323_v59 }
 0x60c   : > { %v1383_v5 = vrot.slane %v1375_v1, %v4323_v59  ;;  %v1390_v42 = vrot.slane %v1376_v2, %v4323_v59 }
 0x60d   : > { %v1395_v6 = vcombine.low %v1367_v3, %v1374_v4  ;;  %v2622_v7 = vcombine.high %v1367_v3, %v1374_v4 }
 0x60e   : > { %v1411_v9 = vcombine.low %v1383_v5, %v1390_v42  ;;  %v2623_v10 = vcombine.high %v1383_v5, %v1390_v42 }
 0x60f   : > { %v3061_v11 = vpop.eup %3060  ;;  %v1402_v12 = vrot.slane %v1395_v6, %v4321_v53  ;;  %v1410_v13 = vrot.slane %v2622_v7, %v4321_v53 }
 0x610   : > { %v3063_v14 = vpop.eup %3062  ;;  %v1418_v15 = vrot.slane %v1411_v9, %v4321_v53  ;;  %v1426_v16 = vrot.slane %v2623_v10, %v4321_v53  ;;  %v1676_v17 = vsel %vm1467_vm2, %v3061_v11, 0.0  ;;  %v1692_v39 = vpack.c.bf16 %v3061_v11, %v3061_v11 }
 0x611   : > { %1677 = vadd.xlane.f32.xlu1 %v1676_v17  ;;  %v1679_v18 = vsel %vm1467_vm2, %v3063_v14, 0.0  ;;  %v1427_v19 = vcombine.low %v1402_v12, %v1410_v13  ;;  %v1428_v20 = vcombine.high %v1402_v12, %v1410_v13  ;;  %v1693_v40 = vpack.c.bf16 %v3063_v14, %v3063_v14 }
 0x612   : > { %1680 = vadd.xlane.f32.xlu0 %v1679_v18  ;;  %v1443_v21 = vcombine.low %v1418_v15, %v1426_v16  ;;  %v1444_v22 = vcombine.high %v1418_v15, %v1426_v16 }
 0x613   : > { %v1435_v23 = vrot.slane %v1427_v19, %v4323_v59  ;;  %v1442_v24 = vrot.slane %v1428_v20, %v4323_v59 }
 0x614   : > { %v1451_v25 = vrot.slane %v1443_v21, %v4323_v59  ;;  %v1458_v26 = vrot.slane %v1444_v22, %v4323_v59 }
 0x616   : > { %v1459_v27 = vcombine.low %v1435_v23, %v1451_v25  ;;  %v1460_v28 = vcombine.high %v1435_v23, %v1451_v25  ;;  %v1461_v29 = vcombine.low %v1442_v24, %v1458_v26  ;;  %v1462_v30 = vcombine.high %v1442_v24, %v1458_v26 }
 0x618   : > { %v1463_v31 = vpack.c.bf16 %v1459_v27, %v1459_v27  ;;  %v1464_v34 = vpack.c.bf16 %v1460_v28, %v1460_v28  ;;  %v1465_v37 = vpack.c.bf16 %v1461_v29, %v1461_v29  ;;  %v1466_v38 = vpack.c.bf16 %v1462_v30, %v1462_v30 }
 0x61a   : > { %v1701_v35 = vsel %vm1699_vm3, %v1463_v31, 0  ;;  %v1747_v36 = vsel %vm1699_vm3, %v1464_v34, 0  ;;  %v1793_v41 = vsel %vm1699_vm3, %v1465_v37, 0  ;;  %v1839_v43 = vsel %vm1699_vm3, %v1466_v38, 0 }
 0x61b   : > { %2746 = vmatpush3.bf16.msra.mxu1 %v1701_v35  ;;  %2752 = vmatpush3.bf16.msra.mxu0 %v1747_v36  ;;  %v3047_v36 = vld [vmem:[#allocation17 + $0x8] sm:$0xff]  }
 0x61c   : > { %2757 = vmatprep.subr.bf16.mxu1 %v3691_v8  ;;  %2763 = vmatprep.subr.bf16.mxu0 %v3691_v8 }
 0x61e   : > { %2748 = vmatmul.mubr.msk.bf16.vlgmr.msra.gmra.mrb[8].mxu1 %vm1467_vm2, %v1692_v39  ;;  %2754 = vmatmul.mubr.msk.bf16.vlgmr.msra.gmra.mrb[20].mxu0 %vm1467_vm2, %v1693_v40 }
 0x61f   : > { %2758 = vmatpush3.bf16.msra.mxu1 %v1793_v41  ;;  %2764 = vmatpush3.bf16.msra.mxu0 %v1839_v43 }
 0x620   : > { %2759 = vmatprep.mubr.msk.bf16.mxu1 %vm3692_vm1, %v3691_v8  ;;  %2765 = vmatprep.mubr.msk.bf16.mxu0 %vm3692_vm1, %v3691_v8 }
 0x621   : > { %2769 = vmatprep.subr.bf16.mxu1 %v3691_v8  ;;  %2777 = vmatprep.subr.bf16.mxu0 %v3691_v8 }
 0x635   : > { %v1660_v44 = vpop.xlane.xlu1 %1659  ;;  %v1663_v45 = vpop.xlane.xlu0 %1662 }
 0x636   : > { %v1666_v46 = vsub.f32 %v4379_v32, %v1660_v44  ;;  %v1667_v47 = vsub.f32 %v4381_v33, %v1663_v45  ;;  %v3046_v32 = vld [vmem:[#allocation17] sm:$0xff]  }
 0x638   : > { %v1672_v48 = vmul.f32 1.442695, %v1666_v46  ;;  %v1674_v49 = vmul.f32 1.442695, %v1667_v47 }
 0x63a   : > { %3064 = vpow2.f32 %v1672_v48 }
 0x63b   : > { %3066 = vpow2.f32 %v1674_v49 }
 0x644   : > { %v3065_v50 = vpop.eup %3064 }
 0x645   : > { %v3067_v51 = vpop.eup %3066  ;;  %v1682_v52 = vsel %vm1467_vm2, %v3065_v50, 0.0  ;;  %v1694_v54 = vpack.c.bf16 %v3065_v50, %v3065_v50 }
 0x646   : > { %1683 = vadd.xlane.f32.xlu1 %v1682_v52  ;;  %v1685_v55 = vsel %vm1467_vm2, %v3067_v51, 0.0  ;;  %v1695_v56 = vpack.c.bf16 %v3067_v51, %v3067_v51 }
 0x647   : > { %1686 = vadd.xlane.f32.xlu0 %v1685_v55  ;;  %2760 = vmatmul.mubr.msk.bf16.vlgmr.msra.gmra.mrb[12].mxu1 %vm1467_vm2, %v1694_v54 }
 0x648   : > { %2766 = vmatmul.mubr.msk.bf16.vlgmr.msra.gmra.mrb[24].mxu0 %vm1467_vm2, %v1695_v56  ;;  %2773 = vmatprep.mubr.msk.bf16.mxu1 %vm3692_vm1, %v3691_v8 }
 0x649   : > { %2781 = vmatprep.mubr.msk.bf16.mxu0 %vm3692_vm1, %v3691_v8  ;;  %2770 = vmatpush3.bf16.msra.mxu1 %v3046_v32 }
 0x64a   : > { %2771 = vmatprep.subr.bf16.mxu1 %v3691_v8 }
 0x64d   : > { %2772 = vmatpush3.bf16.msra.mxu1 %v3047_v36  ;;  %v3056_v36 = vld [vmem:[#allocation26 + $0x30] sm:$0xff]  }
 0x64e   : > { %2785 = vmatprep.subr.bf16.mxu1 %v3691_v8 }
 0x69e   : > { %v1678_v2 = vpop.xlane.xlu1 %1677 }
 0x69f   : > { %v1681_v3 = vpop.xlane.xlu0 %1680  ;;  %3068 = vrcp.f32 %v1678_v2 }
 0x6a0   : > { %3070 = vrcp.f32 %v1681_v3 }
 0x6a9   : > { %v3069_v42 = vpop.eup %3068 }
 0x6aa   : > { %v3071_v6 = vpop.eup %3070 }
 0x6d3   : > { %v1684_v4 = vpop.xlane.xlu1 %1683 }
 0x6d4   : > { %v1687_v5 = vpop.xlane.xlu0 %1686  ;;  %3072 = vrcp.f32 %v1684_v4  ;;  %v2634_v4 = vld [vmem:[#allocation19] ss:$0 sm:$0xff] }
 0x6d5   : > { %3074 = vrcp.f32 %v1687_v5 }
 0x6de   : > { %v3073_v7 = vpop.eup %3072 }
 0x6df   : > { %v3075_v10 = vpop.eup %3074 }
 0x6f1   : > { %v1737_v33 = vpop.f32.mrb[8].mxu1  ;;  %v1783_v57 = vpop.f32.mrb[20].mxu0 }
 0x6f2   : > { %v2749_v58 = vpop.f32.mrb[9].mxu1  ;;  %v2755_v60 = vpop.f32.mrb[21].mxu0  ;;  %v1881_v11 = vmul.f32 %v3069_v42, %v1737_v33  ;;  %v1882_v15 = vmul.f32 %v3071_v6, %v1783_v57 }
 0x6f3   : > { %v1740_v61 = vpop.f32.mrb[10].mxu1  ;;  %v1786_v62 = vpop.f32.mrb[22].mxu0 }
 0x6f4   : > { %v2750_v63 = vpop.f32.mrb[11].mxu1  ;;  %v2756_v1 = vpop.f32.mrb[23].mxu0 }
 0x71a   : > { %v1829_v9 = vpop.f32.mrb[12].mxu1 }
 0x71b   : > { %v1883_v12 = vmul.f32 %v3073_v7, %v1829_v9  ;;  %v1875_v13 = vpop.f32.mrb[24].mxu0  ;;  %v2761_v14 = vpop.f32.mrb[13].mxu1 }
 0x71c   : > { %v1884_v16 = vmul.f32 %v3075_v10, %v1875_v13  ;;  %v2767_v17 = vpop.f32.mrb[25].mxu0  ;;  %v1832_v18 = vpop.f32.mrb[14].mxu1 }
 0x71d   : > { %v1885_v19 = vcombine.low %v1881_v11, %v1883_v12  ;;  %v1886_v20 = vcombine.high %v1881_v11, %v1883_v12  ;;  %v1878_v21 = vpop.f32.mrb[26].mxu0  ;;  %v2762_v22 = vpop.f32.mrb[15].mxu1  ;;  %v3048_v17 = vld [vmem:[#allocation23] sm:$0xff]   ;;  %v3049_v18 = vld [vmem:[#allocation23 + $0x8] sm:$0xff]  }
 0x71e   : > { %v1901_v23 = vcombine.low %v1882_v15, %v1884_v16  ;;  %v1902_v24 = vcombine.high %v1882_v15, %v1884_v16  ;;  %v2768_v25 = vpop.f32.mrb[27].mxu0  ;;  %2778 = vmatpush3.bf16.msra.mxu0 %v3048_v17  ;;  %v3053_v21 = vld [vmem:[#allocation26 + $0x18] sm:$0xff]   ;;  %v3054_v22 = vld [vmem:[#allocation26 + $0x20] sm:$0xff]  }
 0x71f   : > { %v1893_v26 = vrot.slane %v1885_v19, %v4321_v53  ;;  %v1900_v27 = vrot.slane %v1886_v20, %v4321_v53  ;;  %2779 = vmatprep.subr.bf16.mxu0 %v3691_v8  ;;  %v3051_v19 = vld [vmem:[#allocation26 + $0x8] sm:$0xff]   ;;  %v3052_v20 = vld [vmem:[#allocation26 + $0x10] sm:$0xff]  }
 0x720   : > { %v1909_v28 = vrot.slane %v1901_v23, %v4321_v53  ;;  %v1916_v29 = vrot.slane %v1902_v24, %v4321_v53  ;;  %v3055_v23 = vld [vmem:[#allocation26 + $0x28] sm:$0xff]  }
 0x722   : > { %v1917_v30 = vcombine.low %v1893_v26, %v1909_v28  ;;  %v1918_v31 = vcombine.high %v1893_v26, %v1909_v28  ;;  %v1933_v34 = vcombine.low %v1900_v27, %v1916_v29  ;;  %v1934_v35 = vcombine.high %v1900_v27, %v1916_v29  ;;  %2780 = vmatpush3.bf16.msra.mxu0 %v3049_v18  ;;  %v2638_v28 = vld [vmem:[#allocation20] ss:$0 sm:$0xff] }
 0x724   : > { %v1925_v37 = vrot.slane %v1917_v30, %v4323_v59  ;;  %v1932_v38 = vrot.slane %v1918_v31, %v4323_v59  ;;  %v1941_v39 = vrot.slane %v1933_v34, %v4323_v59  ;;  %v1948_v40 = vrot.slane %v1934_v35, %v4323_v59  ;;  %v2639_v30 = vld [vmem:[#allocation22] ss:$0 sm:$0xff] }
 0x726   : > { %v1953_v41 = vcombine.low %v1925_v37, %v1932_v38  ;;  %v2632_v43 = vcombine.high %v1925_v37, %v1932_v38  ;;  %v1969_v44 = vcombine.low %v1941_v39, %v1948_v40  ;;  %v2633_v45 = vcombine.high %v1941_v39, %v1948_v40  ;;  %v3057_v37 = vld [vmem:[#allocation26 + $0x38] sm:$0xff]  }
 0x727   : > { %v2640_v38 = vld [vmem:[#allocation25] ss:$0 sm:$0xff] }
 0x728   : > { %v1960_v46 = vrot.slane %v1953_v41, %v4321_v53  ;;  %v1968_v47 = vrot.slane %v2632_v43, %v4321_v53  ;;  %v1976_v48 = vrot.slane %v1969_v44, %v4321_v53  ;;  %v1984_v49 = vrot.slane %v2633_v45, %v4321_v53 }
 0x72a   : > { %v1986_v50 = vcombine.high %v1960_v46, %v1968_v47  ;;  %v2002_v51 = vcombine.high %v1976_v48, %v1984_v49  ;;  %v1985_v52 = vcombine.low %v1960_v46, %v1968_v47  ;;  %v2001_v54 = vcombine.low %v1976_v48, %v1984_v49  ;;  %v2644_v47 = vld [vmem:[#allocation28] ss:$0 sm:$0xff] }
 0x72c   : > { %v2000_v55 = vrot.slane %v1986_v50, %v4323_v59  ;;  %v2016_v56 = vrot.slane %v2002_v51, %v4323_v59  ;;  %v1993_v32 = vrot.slane %v1985_v52, %v4323_v59  ;;  %v2009_v33 = vrot.slane %v2001_v54, %v4323_v59 }
 0x72e   : > { %v2019_v57 = vcombine.low %v2000_v55, %v2016_v56  ;;  %v2018_v58 = vcombine.high %v1993_v32, %v2009_v33  ;;  %v2020_v60 = vcombine.high %v2000_v55, %v2016_v56  ;;  %v2017_v61 = vcombine.low %v1993_v32, %v2009_v33 }
 0x730   : > { %2026 = vrot.lane.b32.xlu0 %v2019_v57, %s3698_s29  ;;  %2022 = vrot.lane.b32.xlu1 %v2018_v58, %s3699_s30  ;;  %s3701_s29 = smov [#allocation29]  }
 0x731   : > { %s3560_s30 = sshll.u32 %s3701_s29, 4  ;;  %s3561_s30 = int_to_ptr.vmem [resolvable:$false] %s3560_s30 }
 0x732   : > { %p3563_p10 = scmp.lt.s32.totalorder %s4482_s26, %s3561_s30 }
 0x734   : > { %2030 = vrot.lane.b32.xlu1 %v2020_v60, %s3700_s17  ;;  %s3562_s17 = scalar_lea.vmem %s3561_s30, 256 }
 0x735   : > { %p3564_p13 = scmp.lt.s32.totalorder %s3562_s17, %s3556_s22 }
 0x737   : > { %p3565_p2 = por %p3564_p13, %p3563_p10 }
 0x739   : > { %p3566_p8 = pnand %p3565_p2, %p3559_p7 }
 0x7a2   : > { %v2023_v53 = vpop.permute.xlu1 %2022  ;;  %v2027_v62 = vpop.permute.xlu0 %2026 }
 0x7a3   : > { %v2033_v63 = vsel %vm1467_vm2, %v2017_v61, %v2023_v53 }
 0x7a4   : > { %v2035_v2 = vsel %vm2034_vm4, %v2033_v63, %v2027_v62 }
 0x7a6   : > { %v2031_v1 = vpop.permute.xlu1 %2030 }
 0x7a7   : > { %v2037_v3 = vsel %vm2036_vm5, %v2035_v2, %v2031_v1 }
 0x7a8   : > { %v2038_v59 = vpack.c.bf16 %v2037_v3, %v2037_v3 }
 0x7aa   : > { %2774 = vmatmul.mubr.msk.bf16.vlgmr.msra.gmra.mrb[16].mxu1 %vm794_vm0, %v2038_v59 }
 0x7ab   : > { %2801 = vmatprep.mubr.msk.bf16.mxu1 %vm3692_vm1, %v3691_v8 }
 0x87d   : > { %v2099_v5 = vpop.f32.mrb[16].mxu1 }
 0x87e   : > { %v2100_v42 = vadd.f32 %v2634_v4, %v2099_v5  ;;  %v2775_v6 = vpop.f32.mrb[17].mxu1 }
 0x87f   : > { %v2102_v7 = vpop.f32.mrb[18].mxu1 }
 0x880   : > { %v4458_v9 = vadd.f32 %v2100_v42, %v4287_v0  ;;  %v2776_v10 = vpop.f32.mrb[19].mxu1  ;;  %v3050_v0 = vld [vmem:[#allocation26] sm:$0xff]  }
 0x881   : > { %2786 = vmatpush3.bf16.msra.mxu1 %v3050_v0 }
 0x882   : > { %v2108_v11 = vsel %vm794_vm0, %v4458_v9, 0.0  ;;  %2787 = vmatprep.subr.bf16.mxu1 %v3691_v8 }
 0x883   : > { %2109 = vadd.xlane.f32.xlu1 %v2108_v11 }
 0x885   : > { %2788 = vmatpush3.bf16.msra.mxu1 %v3051_v19 }
 0x886   : > { %2789 = vmatprep.subr.bf16.mxu1 %v3691_v8 }
 0x889   : > { %2790 = vmatpush3.bf16.msra.mxu1 %v3052_v20 }
 0x88a   : > { %2791 = vmatprep.subr.bf16.mxu1 %v3691_v8 }
 0x88d   : > { %2792 = vmatpush3.bf16.msra.mxu1 %v3053_v21 }
 0x88e   : > { %2793 = vmatprep.subr.bf16.mxu1 %v3691_v8 }
 0x891   : > { %2794 = vmatpush3.bf16.msra.mxu1 %v3054_v22 }
 0x892   : > { %2795 = vmatprep.subr.bf16.mxu1 %v3691_v8 }
 0x895   : > { %2796 = vmatpush3.bf16.msra.mxu1 %v3055_v23 }
 0x896   : > { %2797 = vmatprep.subr.bf16.mxu1 %v3691_v8 }
 0x899   : > { %2798 = vmatpush3.bf16.msra.mxu1 %v3056_v36 }
 0x89a   : > { %2799 = vmatprep.subr.bf16.mxu1 %v3691_v8 }
 0x89d   : > { %2800 = vmatpush3.bf16.msra.mxu1 %v3057_v37 }
 0x910   : > { %v2110_v12 = vpop.xlane.xlu1 %2109 }
 0x911   : > { %v2111_v13 = vmul.f32 0.03125, %v2110_v12 }
 0x913   : > { %v2112_v14 = vsub.f32 %v4458_v9, %v2111_v13 }
 0x915   : > { %v2113_v15 = vmul.f32 %v2112_v14, %v2112_v14 }
 0x917   : > { %v2114_v16 = vsel %vm794_vm0, %v2113_v15, 0.0 }
 0x918   : > { %2115 = vadd.xlane.f32.xlu0 %v2114_v16 }
 0x9a5   : > { %v2116_v24 = vpop.xlane.xlu0 %2115 }
 0x9a6   : > { %v2117_v25 = vmul.f32 0.03125, %v2116_v24 }
 0x9a8   : > { %v2118_v26 = vadd.f32 1e-05, %v2117_v25 }
 0x9aa   : > { %3076 = vrsqrt.f32 %v2118_v26 }
 0x9b4   : > { %v3077_v27 = vpop.eup %3076 }
 0x9b5   : > { %v2120_v29 = vmul.f32 %v3077_v27, %v2112_v14 }
 0x9b7   : > { %v2127_v31 = vmul.f32 %v2638_v28, %v2120_v29 }
 0x9b9   : > { %v2134_v34 = vadd.f32 %v2639_v30, %v2127_v31 }
 0x9bb   : > { %v2135_v35 = vpack.c.bf16 %v2134_v34, %v2134_v34 }
 0x9bd   : > { %2782 = vmatmul.mubr.msk.bf16.vlgmr.msra.gmra.mrb[28].mxu0 %vm794_vm0, %v2135_v35 }
 0xa90   : > { %v2196_v39 = vpop.f32.mrb[28].mxu0 }
 0xa91   : > { %v2197_v40 = vadd.f32 %v2640_v38, %v2196_v39  ;;  %v2783_v41 = vpop.f32.mrb[29].mxu0 }
 0xa92   : > { %v2199_v43 = vpop.f32.mrb[30].mxu0 }
 0xa93   : > { %v2202_v44 = vmax.f32 %v2197_v40, 0.0  ;;  %v2784_v45 = vpop.f32.mrb[31].mxu0 }
 0xa95   : > { %v2203_v46 = vpack.c.bf16 %v2202_v44, %v2202_v44 }
 0xa97   : > { %2802 = vmatmul.mubr.bf16.vlgmr.msra.gmra.mrb[20].mxu1 %v2203_v46 }
 0xb6a   : > { %v2309_v48 = vpop.f32.mrb[20].mxu1 }
 0xb6b   : > { %v2310_v8 = vadd.f32 %v2644_v47, %v2309_v48  ;;  %v2803_v49 = vpop.f32.mrb[21].mxu1 }
 0xb6c   : > { %v2312_v50 = vpop.f32.mrb[22].mxu1 }
 0xb6d   : > { %v2315_v51 = vadd.f32 %v2310_v8, %v4458_v9  ;;  %v2804_v52 = vpop.f32.mrb[23].mxu1 }
 0xb6f   : > { %2316 = vst.msk [vmem:[%s789_s27] sm:$0xff] %vm794_vm0, %v2315_v51 }
 0xb70   : > { %3569 = shalt.err (!%p3566_p8)
}
 0xb71   : > { %s3570_s21 = scalar_lea.hbm %s4480_s24, 128  ;;  %s3574_s27 = scalar_lea.hbm %s4608_s4, 256 }
 0xb72   : > { %p3571_p9 = scmp.ne.s32.totalorder %s4480_s24, %s3570_s21  ;;  %p3575_p3 = scmp.lt.u32.totalorder %s4480_s24, %s4608_s4 }
 0xb73   : > { %p3576_p1 = scmp.lt.u32.totalorder %s3574_s27, %s3570_s21  ;;  %p3578_p11 = scmp.lt.u32.totalorder %s3570_s21, %s4480_s24 }
 0xb74   : > { %p3572_p4 = pnand %p3571_p9, %p4609_p0 }
 0xb75   : > { %p3577_p12 = por %p3576_p1, %p3575_p3 }
 0xb76   : > { %p3573_p6 = pneg %p3572_p4 }
 0xb77   : > { %p3579_p5 = por %p3578_p11, %p3577_p12 }
 0xb79   : > { %p3580_p7 = pnand %p3579_p5, %p3573_p6 }
 0xb7b   : > { %3583 = shalt.err (!%p3580_p7)
}
 0xb7c   : > { %2871 = dma.vmem_to_hbm [thread:$0]  (%p4609_p0), %s4482_s26, 128, %s4480_s24, %s2318_s20  }
 0xb7d PF: > { %s4610_s22 = sld [smem:[#allocation40_spill]]  ;;  %s4611_s29 = sld [smem:[#allocation45_spill]] }
 0xb7e   : > { %p4612_p10 = scmp.ne.s32.totalorder %s4599_s18, 0 }
 0xb83   : > { %s2344_s30 = sand.u32 1, %s4610_s22   ;;  %p4613_p13 = scmp.ge.s32.totalorder %s4611_s29, 2 }
 0xb84   : > { %s2345_s17 = scalar_lea.sflag [#allocation4], %s2344_s30 }
 0xb85   : > { %p2927_p2 = pnand %p4613_p13, %p4612_p10 }
 0xb87   : > { %3645 = dma.done.wait (!%p2927_p2), %s2345_s17, 128  }
 0xb88   : > { %3647 = vsyncadd (!%p2927_p2), %s2345_s17, 4294967168  ;;  %s41_s29 = sadd.s32 1, %s4611_s29   ;;  %s4614_s24 = sld [smem:[#allocation41_spill]] }
 0xb89   : > { %p38_p8 = scmp.ge.s32.totalorder %s41_s29, 4   ;;  %s4615_s25 = sld [smem:[#allocation42_spill]] }
 0xb8a   : > { %s4616_s27 = sld [smem:[#allocation44_spill]]  ;;  %s4617_s26 = smov %s4195_s23 }
 0xb8b   : > { %s4618_s28 = smov %s4620_s3  ;;  %40 = sbr.rel (!%p38_p8) target bundleno = 21 (0x15), region = 197 }
 0xb92   :  { %2350 = vsyncpa [#allocation3], 1 }
 0xb93   :  { %2352 = vsyncpa [#allocation3 + $0x1], 1 }
 0xb94   :  { %2353 = vsyncpa [#allocation6], 1 }
 0xb95   :  { %2354 = vsyncpa [#allocation9], 1 }
 0xb96   :  { %2355 = vsyncpa [#allocation12], 1 }
 0xb97   :  { %2356 = vsyncpa [#allocation15], 1 }
 0xb98   :  { %2357 = vsyncpa [#allocation18], 1 }
 0xb99   :  { %2358 = vsyncpa [#allocation21], 1 }
 0xb9a   :  { %2359 = vsyncpa [#allocation24], 1 }
 0xb9b   :  { %2360 = vsyncpa [#allocation27], 1 }
 0xb9c   :  { %2361 = vsyncpa [#allocation4], 1 }
 0xb9d   :  { %2363 = vsyncpa [#allocation4 + $0x1], 1 }

</bundles_post_ra>
